<compile_context>
chip_gen: v7x
topology: tpu7x:2x2x1
jax: 0.10.0
libtpu: 0.0.40
codegen_flags: <defaults>
</compile_context>

<pallas_src>
import functools

import jax
import jax.numpy as jnp
from jax.experimental import pallas as pl
from jax.experimental.pallas import tpu as pltpu


# ---------------------------------------------------------------------------
# Fused graph-conv stack kernel (layer-0 MLP + all gconv layers, one call)
# ---------------------------------------------------------------------------

def make_fused_layers_kernel(*, num_layers, latent_dim, graphs_per_step,
                             nodes_per_graph, out_width_padded, compute_dtype):
    D = latent_dim
    G = graphs_per_step
    n_g = nodes_per_graph
    M = G * n_g
    out_width = num_layers * D

    def kernel(adj_ref, x_ref, w10_ref, b10_ref, w20_ref, b20_ref,
               w1cat_ref, b1s_ref, w2s_ref, b2s_ref, out_ref):
        # ---- layer 0: ego = mlps[0](node_feat) ------------------------------
        # Graph axis folded into the matmul M dimension: (M, F) @ (F, D).
        x = x_ref[...].astype(compute_dtype)
        h = jnp.dot(x, w10_ref[...],
                    preferred_element_type=jnp.float32) + b10_ref[...]
        h = jnp.maximum(h, 0.0)
        ego = jnp.dot(h.astype(compute_dtype), w20_ref[...],
                      preferred_element_type=jnp.float32) + b20_ref[...]
        # Write each layer's ego into the output slab as soon as it is
        # produced; the HBM writeback is one lane-dense (M, 128k) block.
        out_ref[:, 0:D] = ego

        # Adjacency diagonal blocks: streamed f32, cast on-chip.
        adj = adj_ref[...].astype(compute_dtype)          # (G, n_g, n_g)

        # ---- layers 1 .. num_layers-1 (static unroll, ego stays on-chip) ----
        for layer in range(1, num_layers):
            i = layer - 1
            ego_c = ego.astype(compute_dtype)
            # neig = n2n @ ego, restricted to this step's diagonal blocks.
            neig = jnp.einsum('gij,gjd->gid', adj, ego_c.reshape(G, n_g, D),
                              preferred_element_type=jnp.float32)
            neig = neig.reshape(M, D)
            # cat([ego, neig, neig+ego], 1) @ W1 folded into ONE matmul:
            #   [ego | neig] @ [[W1a + W1c], [W1b + W1c]]        (K = 2D)
            cat = jnp.concatenate([ego_c, neig.astype(compute_dtype)], axis=-1)
            h = jnp.dot(cat, w1cat_ref[i],
                        preferred_element_type=jnp.float32) + b1s_ref[i]
            h = jnp.maximum(h, 0.0)
            ego = jnp.dot(h.astype(compute_dtype), w2s_ref[i],
                          preferred_element_type=jnp.float32) + b2s_ref[i]
            out_ref[:, layer * D:(layer + 1) * D] = ego

        # Zero the lane padding so the whole slab is defined.
        if out_width_padded > out_width:
            out_ref[:, out_width:] = jnp.zeros(
                (M, out_width_padded - out_width), out_ref.dtype)

    return kernel


def _choose_graphs_per_step(B, n_g, feat_dim, out_width_padded,
                            *, vmem_budget_bytes=40 << 20):
    """Largest divisor G of B whose double-buffered per-step working set fits
    the VMEM budget while keeping >= 2 grid steps (so ("parallel",) can split
    work across the two TensorCores on v7x)."""
    best = 1
    for G in range(1, B + 1):
        if B % G:
            continue
        if B >= 2 and B // G < 2:
            continue
        M = G * n_g
        per_step = (G * n_g * n_g * 4          # f32 adjacency block
                    + M * feat_dim * 4         # f32 node features
                    + M * out_width_padded * 4)  # f32 output slab
        if 2 * per_step > vmem_budget_bytes:   # double-buffered pipeline
            continue
        best = G
    return best


def fused_gnn_layers(adj_blocks, node_feat, params, *, num_layers, latent_dim,
                     compute_dtype=jnp.bfloat16, graphs_per_step=None):
    """Layer-0 MLP + all graph-conv layers in a single pallas_call.

    adj_blocks: (B, n_g, n_g) diagonal blocks of the block-diagonal n2n matrix.
    node_feat : (B * n_g, F) node features, graphs concatenated.
    Returns   : (B * n_g, pad128(num_layers * latent_dim)) per-layer egos,
                concatenated along lanes (padded lanes are zero).
    """
    assert num_layers >= 2
    B, n_g, _ = adj_blocks.shape
    N, F = node_feat.shape
    assert N == B * n_g
    D = latent_dim
    out_width = num_layers * D
    out_width_padded = ((out_width + 127) // 128) * 128   # lane-dense slab

    if graphs_per_step is None:
        graphs_per_step = _choose_graphs_per_step(B, n_g, F, out_width_padded)
    G = graphs_per_step
    assert B % G == 0
    M = G * n_g
    L1 = num_layers - 1

    w10, b10, w20, b20 = params["mlp"][0]

    # Fold W1 = [W1a; W1b; W1c] (acting on cat([ego, neig, neig+ego])) into a
    # single (2D, D) matrix per layer:  [W1a + W1c ; W1b + W1c].
    w1cat_l, b1_l, w2_l, b2_l = [], [], [], []
    for layer in range(1, num_layers):
        w1, b1, w2, b2 = params["mlp"][layer]
        w1a, w1b, w1c = w1[:D], w1[D:2 * D], w1[2 * D:]
        w1cat_l.append(jnp.concatenate([w1a + w1c, w1b + w1c], axis=0))
        b1_l.append(b1)
        w2_l.append(w2)
        b2_l.append(b2)
    w1cat = jnp.stack(w1cat_l).astype(compute_dtype)      # (L-1, 2D, D)
    b1s = jnp.stack(b1_l)                                  # (L-1, 1, D) f32
    w2s = jnp.stack(w2_l).astype(compute_dtype)            # (L-1, D, D)
    b2s = jnp.stack(b2_l)                                  # (L-1, 1, D) f32

    kernel = make_fused_layers_kernel(
        num_layers=num_layers, latent_dim=D, graphs_per_step=G,
        nodes_per_graph=n_g, out_width_padded=out_width_padded,
        compute_dtype=compute_dtype)

    return pl.pallas_call(
        kernel,
        out_shape=jax.ShapeDtypeStruct((B * n_g, out_width_padded),
                                       jnp.float32),
        grid=(B // G,),
        in_specs=[
            # adjacency streamed in its storage dtype (f32), cast on-chip.
            pl.BlockSpec((G, n_g, n_g), lambda g: (g, 0, 0)),
            pl.BlockSpec((M, F), lambda g: (g, 0)),             # node feats
            pl.BlockSpec((F, D), lambda g: (0, 0)),             # W1 layer 0
            pl.BlockSpec((1, D), lambda g: (0, 0)),             # b1 layer 0
            pl.BlockSpec((D, D), lambda g: (0, 0)),             # W2 layer 0
            pl.BlockSpec((1, D), lambda g: (0, 0)),             # b2 layer 0
            pl.BlockSpec((L1, 2 * D, D), lambda g: (0, 0, 0)),  # folded W1 stack
            pl.BlockSpec((L1, 1, D), lambda g: (0, 0, 0)),      # b1 stack
            pl.BlockSpec((L1, D, D), lambda g: (0, 0, 0)),      # W2 stack
            pl.BlockSpec((L1, 1, D), lambda g: (0, 0, 0)),      # b2 stack
        ],
        out_specs=pl.BlockSpec((M, out_width_padded), lambda g: (g, 0)),
        compiler_params=pltpu.CompilerParams(
            dimension_semantics=("parallel",),       # graph steps independent
            vmem_limit_bytes=48 * 1024 * 1024),
    )(adj_blocks, node_feat,
      w10.astype(compute_dtype), b10, w20.astype(compute_dtype), b20,
      w1cat, b1s, w2s, b2s)


# ---------------------------------------------------------------------------
# IHGNN forward (Pallas kernel + JAX glue for sort-pooling / final dense)
# ---------------------------------------------------------------------------

def ihgnn_forward(node_feat, adj_blocks, params, *, num_layers, latent_dim, k):
    B, n_g, _ = adj_blocks.shape
    D = latent_dim
    width = num_layers * D
    # TODO(synk): graphs with fewer than k nodes would need zero-padding as in
    # the reference; here every graph has n_g >= k so that branch is unused.
    assert k <= n_g

    slab = fused_gnn_layers(adj_blocks, node_feat, params,
                            num_layers=num_layers, latent_dim=latent_dim)
    out_all = slab[:, :width].reshape(B, n_g, width)

    # Sort-pooling: wl_color = last channel of the last layer's ego.
    wl = out_all[:, :, -1]                                  # (B, n_g)
    _, topk_idx = jax.lax.top_k(wl, k)                      # descending
    sort_graphs = jnp.take_along_axis(out_all, topk_idx[:, :, None], axis=1)
    to_dense = sort_graphs.reshape(B, k * width)

    # Final dense layer: tiny (B, k*L*D) @ (k*L*D, out_dim) with out_dim=8 ->
    # left to XLA (a Pallas kernel here would be all masked stores + launch
    # overhead).  ReLU applied once: the reference applies conv1d_activation
    # twice but ReLU is idempotent.
    w_out, b_out = params["out"]
    y = jnp.dot(to_dense, w_out) + b_out
    return jnp.maximum(y, 0.0)


# ---------------------------------------------------------------------------
# Deterministic parameter / input construction and driver
# ---------------------------------------------------------------------------

def init_params(key, *, num_node_feats, latent_dim, num_layers, k, output_dim):
    params = {"mlp": []}
    scale = 0.1

    def draw(key, shape):
        return scale * jax.random.normal(key, shape, dtype=jnp.float32)

    keys = jax.random.split(key, 4 * num_layers + 2)
    ki = 0
    for layer in range(num_layers):
        din = num_node_feats if layer == 0 else 3 * latent_dim
        w1 = draw(keys[ki], (din, latent_dim)); ki += 1
        b1 = draw(keys[ki], (1, latent_dim)); ki += 1
        w2 = draw(keys[ki], (latent_dim, latent_dim)); ki += 1
        b2 = draw(keys[ki], (1, latent_dim)); ki += 1
        params["mlp"].append((w1, b1, w2, b2))

    dense_dim = k * num_layers * latent_dim
    w_out = draw(keys[ki], (dense_dim, output_dim)); ki += 1
    b_out = draw(keys[ki], (1, output_dim)); ki += 1
    params["out"] = (w_out, b_out)
    return params


if __name__ == "__main__":
    key = jax.random.PRNGKey(0)

    # Small, module-consistent shapes.  With B=8, n_g=32 the wrapper picks
    # G=4 graphs per grid step -> M = 128 rows per matmul, grid of 2 steps.
    num_graphs = 8
    nodes_per_graph = 32
    n_total = num_graphs * nodes_per_graph
    num_node_feats = 4
    latent_dim = 32         # latent_dim[0]
    num_layers = 3
    k_sortpool = 16
    output_dim = 8

    k_feat, k_param = jax.random.split(key)

    # Node features (all graphs concatenated, node-major).
    node_feat = jax.random.normal(k_feat, (n_total, num_node_feats),
                                  dtype=jnp.float32)

    # n2n adjacency: ring graph per graph.  Only the diagonal blocks of the
    # block-diagonal n2n matrix are materialized / streamed.
    idx = jnp.arange(nodes_per_graph)
    adj_g = jnp.zeros((nodes_per_graph, nodes_per_graph), jnp.float32)
    adj_g = adj_g.at[idx, (idx + 1) % nodes_per_graph].set(1.0)
    adj_g = adj_g + adj_g.T
    adj_blocks = jnp.stack([adj_g] * num_graphs)   # (B, n_g, n_g)

    params = init_params(k_param,
                         num_node_feats=num_node_feats,
                         latent_dim=latent_dim,
                         num_layers=num_layers,
                         k=k_sortpool,
                         output_dim=output_dim)

    fwd = jax.jit(functools.partial(ihgnn_forward,
                                    num_layers=num_layers,
                                    latent_dim=latent_dim,
                                    k=k_sortpool))

    result = fwd(node_feat, adj_blocks, params)
    jax.block_until_ready(result)
    assert result.shape == (num_graphs, output_dim)
    print("KERNEL_OK")
</pallas_src>

<mosaic_0001>
module attributes {stable_mosaic.version = 11 : i64} {
  func.func @kernel(%arg0: i32, %arg1: memref<4x32x32xf32, #tpu.memory_space<vmem>>, %arg2: memref<128x4xf32, #tpu.memory_space<vmem>>, %arg3: memref<4x32xbf16, #tpu.memory_space<vmem>>, %arg4: memref<1x32xf32, #tpu.memory_space<vmem>>, %arg5: memref<32x32xbf16, #tpu.memory_space<vmem>>, %arg6: memref<1x32xf32, #tpu.memory_space<vmem>>, %arg7: memref<2x64x32xbf16, #tpu.memory_space<vmem>>, %arg8: memref<2x1x32xf32, #tpu.memory_space<vmem>>, %arg9: memref<2x32x32xbf16, #tpu.memory_space<vmem>>, %arg10: memref<2x1x32xf32, #tpu.memory_space<vmem>>, %arg11: memref<128x128xf32, #tpu.memory_space<vmem>>) attributes {dimension_semantics = [#tpu.dimension_semantics<parallel>], iteration_bounds = array<i64: 2>, scalar_prefetch = 0 : i64, scratch_operands = 0 : i64, tpu.core_type = #tpu.core_type<tc>, window_params = [{transform_indices = @transform_0, window_bounds = array<i64: 4, 32, 32>}, {transform_indices = @transform_1, window_bounds = array<i64: 128, 4>}, {pipeline_mode = #tpu.pipeline_mode<synchronous>, transform_indices = @transform_2, window_bounds = array<i64: 4, 32>}, {pipeline_mode = #tpu.pipeline_mode<synchronous>, transform_indices = @transform_3, window_bounds = array<i64: 1, 32>}, {pipeline_mode = #tpu.pipeline_mode<synchronous>, transform_indices = @transform_4, window_bounds = array<i64: 32, 32>}, {pipeline_mode = #tpu.pipeline_mode<synchronous>, transform_indices = @transform_5, window_bounds = array<i64: 1, 32>}, {pipeline_mode = #tpu.pipeline_mode<synchronous>, transform_indices = @transform_6, window_bounds = array<i64: 2, 64, 32>}, {pipeline_mode = #tpu.pipeline_mode<synchronous>, transform_indices = @transform_7, window_bounds = array<i64: 2, 1, 32>}, {pipeline_mode = #tpu.pipeline_mode<synchronous>, transform_indices = @transform_8, window_bounds = array<i64: 2, 32, 32>}, {pipeline_mode = #tpu.pipeline_mode<synchronous>, transform_indices = @transform_9, window_bounds = array<i64: 2, 1, 32>}, {transform_indices = @transform_10, window_bounds = array<i64: 128, 128>}]} {
    %c0 = arith.constant 0 : index
    %c0_0 = arith.constant 0 : index
    %0 = vector.load %arg2[%c0, %c0_0] : memref<128x4xf32, #tpu.memory_space<vmem>>, vector<128x4xf32>
    %1 = arith.truncf %0 : vector<128x4xf32> to vector<128x4xbf16>
    %c0_1 = arith.constant 0 : index
    %c0_2 = arith.constant 0 : index
    %2 = vector.load %arg3[%c0_1, %c0_2] : memref<4x32xbf16, #tpu.memory_space<vmem>>, vector<4x32xbf16>
    %cst = arith.constant dense<0.000000e+00> : vector<128x32xf32>
    %3 = tpu.matmul %1, %2, %cst {dimension_numbers = #tpu.dot_dimension_numbers<[1], [0], [0], [1], [0, 0, 1, 1], [], []>} : vector<128x4xbf16>, vector<4x32xbf16>, vector<128x32xf32> -> vector<128x32xf32>
    %c0_3 = arith.constant 0 : index
    %c0_4 = arith.constant 0 : index
    %4 = vector.load %arg4[%c0_3, %c0_4] : memref<1x32xf32, #tpu.memory_space<vmem>>, vector<1x32xf32>
    %5 = vector.broadcast %4 : vector<1x32xf32> to vector<128x32xf32>
    %6 = arith.addf %3, %5 : vector<128x32xf32>
    %cst_5 = arith.constant 0.000000e+00 : f32
    %7 = vector.broadcast %cst_5 : f32 to vector<128x32xf32>
    %8 = arith.maximumf %6, %7 : vector<128x32xf32>
    %9 = arith.truncf %8 : vector<128x32xf32> to vector<128x32xbf16>
    %c0_6 = arith.constant 0 : index
    %c0_7 = arith.constant 0 : index
    %10 = vector.load %arg5[%c0_6, %c0_7] : memref<32x32xbf16, #tpu.memory_space<vmem>>, vector<32x32xbf16>
    %cst_8 = arith.constant dense<0.000000e+00> : vector<128x32xf32>
    %11 = tpu.matmul %9, %10, %cst_8 {dimension_numbers = #tpu.dot_dimension_numbers<[1], [0], [0], [1], [0, 0, 1, 1], [], []>} : vector<128x32xbf16>, vector<32x32xbf16>, vector<128x32xf32> -> vector<128x32xf32>
    %c0_9 = arith.constant 0 : index
    %c0_10 = arith.constant 0 : index
    %12 = vector.load %arg6[%c0_9, %c0_10] : memref<1x32xf32, #tpu.memory_space<vmem>>, vector<1x32xf32>
    %13 = vector.broadcast %12 : vector<1x32xf32> to vector<128x32xf32>
    %14 = arith.addf %11, %13 : vector<128x32xf32>
    %c0_11 = arith.constant 0 : index
    %c0_12 = arith.constant 0 : index
    %15 = vector.load %arg11[%c0_11, %c0_12] : memref<128x128xf32, #tpu.memory_space<vmem>>, vector<128x32xf32>
    tpu.vector_store %arg11[%c0_11, %c0_12], %14 {strides = array<i32>} : memref<128x128xf32, #tpu.memory_space<vmem>>, vector<128x32xf32>,
    %c0_13 = arith.constant 0 : index
    %c0_14 = arith.constant 0 : index
    %c0_15 = arith.constant 0 : index
    %16 = vector.load %arg1[%c0_13, %c0_14, %c0_15] : memref<4x32x32xf32, #tpu.memory_space<vmem>>, vector<4x32x32xf32>
    %17 = arith.truncf %16 : vector<4x32x32xf32> to vector<4x32x32xbf16>
    %18 = arith.truncf %14 : vector<128x32xf32> to vector<128x32xbf16>
    %19 = vector.shape_cast %18 : vector<128x32xbf16> to vector<4x32x32xbf16>
    "tpu.trace_start"() <{level = 10 : i32, message = "gij,gjd->gid"}> : () -> ()
    %cst_16 = arith.constant dense<0.000000e+00> : vector<4x32x32xf32>
    %20 = tpu.matmul %17, %19, %cst_16 {dimension_numbers = #tpu.dot_dimension_numbers<[2], [1], [1], [2], [0, 0, 0, 1, 1, 2], [0], [0]>} : vector<4x32x32xbf16>, vector<4x32x32xbf16>, vector<4x32x32xf32> -> vector<4x32x32xf32>
    "tpu.trace_stop"() : () -> ()
    %21 = vector.shape_cast %20 : vector<4x32x32xf32> to vector<128x32xf32>
    %22 = arith.truncf %21 : vector<128x32xf32> to vector<128x32xbf16>
    %23 = tpu.concatenate %18, %22 in 1 : vector<128x32xbf16>, vector<128x32xbf16> -> vector<128x64xbf16>
    %c0_17 = arith.constant 0 : index
    %c0_18 = arith.constant 0 : index
    %c0_19 = arith.constant 0 : index
    %24 = vector.load %arg7[%c0_17, %c0_18, %c0_19] : memref<2x64x32xbf16, #tpu.memory_space<vmem>>, vector<1x64x32xbf16>
    %25 = vector.shape_cast %24 : vector<1x64x32xbf16> to vector<64x32xbf16>
    %cst_20 = arith.constant dense<0.000000e+00> : vector<128x32xf32>
    %26 = tpu.matmul %23, %25, %cst_20 {dimension_numbers = #tpu.dot_dimension_numbers<[1], [0], [0], [1], [0, 0, 1, 1], [], []>} : vector<128x64xbf16>, vector<64x32xbf16>, vector<128x32xf32> -> vector<128x32xf32>
    %c0_21 = arith.constant 0 : index
    %c0_22 = arith.constant 0 : index
    %c0_23 = arith.constant 0 : index
    %27 = vector.load %arg8[%c0_21, %c0_22, %c0_23] : memref<2x1x32xf32, #tpu.memory_space<vmem>>, vector<1x1x32xf32>
    %28 = vector.shape_cast %27 : vector<1x1x32xf32> to vector<1x32xf32>
    %29 = vector.broadcast %28 : vector<1x32xf32> to vector<128x32xf32>
    %30 = arith.addf %26, %29 : vector<128x32xf32>
    %cst_24 = arith.constant 0.000000e+00 : f32
    %31 = vector.broadcast %cst_24 : f32 to vector<128x32xf32>
    %32 = arith.maximumf %30, %31 : vector<128x32xf32>
    %33 = arith.truncf %32 : vector<128x32xf32> to vector<128x32xbf16>
    %c0_25 = arith.constant 0 : index
    %c0_26 = arith.constant 0 : index
    %c0_27 = arith.constant 0 : index
    %34 = vector.load %arg9[%c0_25, %c0_26, %c0_27] : memref<2x32x32xbf16, #tpu.memory_space<vmem>>, vector<1x32x32xbf16>
    %35 = vector.shape_cast %34 : vector<1x32x32xbf16> to vector<32x32xbf16>
    %cst_28 = arith.constant dense<0.000000e+00> : vector<128x32xf32>
    %36 = tpu.matmul %33, %35, %cst_28 {dimension_numbers = #tpu.dot_dimension_numbers<[1], [0], [0], [1], [0, 0, 1, 1], [], []>} : vector<128x32xbf16>, vector<32x32xbf16>, vector<128x32xf32> -> vector<128x32xf32>
    %c0_29 = arith.constant 0 : index
    %c0_30 = arith.constant 0 : index
    %c0_31 = arith.constant 0 : index
    %37 = vector.load %arg10[%c0_29, %c0_30, %c0_31] : memref<2x1x32xf32, #tpu.memory_space<vmem>>, vector<1x1x32xf32>
    %38 = vector.shape_cast %37 : vector<1x1x32xf32> to vector<1x32xf32>
    %39 = vector.broadcast %38 : vector<1x32xf32> to vector<128x32xf32>
    %40 = arith.addf %36, %39 : vector<128x32xf32>
    %c0_32 = arith.constant 0 : index
    %c32 = arith.constant 32 : index
    %41 = vector.load %arg11[%c0_32, %c32] : memref<128x128xf32, #tpu.memory_space<vmem>>, vector<128x32xf32>
    tpu.vector_store %arg11[%c0_32, %c32], %40 {strides = array<i32>} : memref<128x128xf32, #tpu.memory_space<vmem>>, vector<128x32xf32>,
    %42 = arith.truncf %40 : vector<128x32xf32> to vector<128x32xbf16>
    %43 = vector.shape_cast %42 : vector<128x32xbf16> to vector<4x32x32xbf16>
    "tpu.trace_start"() <{level = 10 : i32, message = "gij,gjd->gid"}> : () -> ()
    %cst_33 = arith.constant dense<0.000000e+00> : vector<4x32x32xf32>
    %44 = tpu.matmul %17, %43, %cst_33 {dimension_numbers = #tpu.dot_dimension_numbers<[2], [1], [1], [2], [0, 0, 0, 1, 1, 2], [0], [0]>} : vector<4x32x32xbf16>, vector<4x32x32xbf16>, vector<4x32x32xf32> -> vector<4x32x32xf32>
    "tpu.trace_stop"() : () -> ()
    %45 = vector.shape_cast %44 : vector<4x32x32xf32> to vector<128x32xf32>
    %46 = arith.truncf %45 : vector<128x32xf32> to vector<128x32xbf16>
    %47 = tpu.concatenate %42, %46 in 1 : vector<128x32xbf16>, vector<128x32xbf16> -> vector<128x64xbf16>
    %c1 = arith.constant 1 : index
    %c0_34 = arith.constant 0 : index
    %c0_35 = arith.constant 0 : index
    %48 = vector.load %arg7[%c1, %c0_34, %c0_35] : memref<2x64x32xbf16, #tpu.memory_space<vmem>>, vector<1x64x32xbf16>
    %49 = vector.shape_cast %48 : vector<1x64x32xbf16> to vector<64x32xbf16>
    %cst_36 = arith.constant dense<0.000000e+00> : vector<128x32xf32>
    %50 = tpu.matmul %47, %49, %cst_36 {dimension_numbers = #tpu.dot_dimension_numbers<[1], [0], [0], [1], [0, 0, 1, 1], [], []>} : vector<128x64xbf16>, vector<64x32xbf16>, vector<128x32xf32> -> vector<128x32xf32>
    %c1_37 = arith.constant 1 : index
    %c0_38 = arith.constant 0 : index
    %c0_39 = arith.constant 0 : index
    %51 = vector.load %arg8[%c1_37, %c0_38, %c0_39] : memref<2x1x32xf32, #tpu.memory_space<vmem>>, vector<1x1x32xf32>
    %52 = vector.shape_cast %51 : vector<1x1x32xf32> to vector<1x32xf32>
    %53 = vector.broadcast %52 : vector<1x32xf32> to vector<128x32xf32>
    %54 = arith.addf %50, %53 : vector<128x32xf32>
    %cst_40 = arith.constant 0.000000e+00 : f32
    %55 = vector.broadcast %cst_40 : f32 to vector<128x32xf32>
    %56 = arith.maximumf %54, %55 : vector<128x32xf32>
    %57 = arith.truncf %56 : vector<128x32xf32> to vector<128x32xbf16>
    %c1_41 = arith.constant 1 : index
    %c0_42 = arith.constant 0 : index
    %c0_43 = arith.constant 0 : index
    %58 = vector.load %arg9[%c1_41, %c0_42, %c0_43] : memref<2x32x32xbf16, #tpu.memory_space<vmem>>, vector<1x32x32xbf16>
    %59 = vector.shape_cast %58 : vector<1x32x32xbf16> to vector<32x32xbf16>
    %cst_44 = arith.constant dense<0.000000e+00> : vector<128x32xf32>
    %60 = tpu.matmul %57, %59, %cst_44 {dimension_numbers = #tpu.dot_dimension_numbers<[1], [0], [0], [1], [0, 0, 1, 1], [], []>} : vector<128x32xbf16>, vector<32x32xbf16>, vector<128x32xf32> -> vector<128x32xf32>
    %c1_45 = arith.constant 1 : index
    %c0_46 = arith.constant 0 : index
    %c0_47 = arith.constant 0 : index
    %61 = vector.load %arg10[%c1_45, %c0_46, %c0_47] : memref<2x1x32xf32, #tpu.memory_space<vmem>>, vector<1x1x32xf32>
    %62 = vector.shape_cast %61 : vector<1x1x32xf32> to vector<1x32xf32>
    %63 = vector.broadcast %62 : vector<1x32xf32> to vector<128x32xf32>
    %64 = arith.addf %60, %63 : vector<128x32xf32>
    %c0_48 = arith.constant 0 : index
    %c64 = arith.constant 64 : index
    %65 = vector.load %arg11[%c0_48, %c64] : memref<128x128xf32, #tpu.memory_space<vmem>>, vector<128x32xf32>
    tpu.vector_store %arg11[%c0_48, %c64], %64 {strides = array<i32>} : memref<128x128xf32, #tpu.memory_space<vmem>>, vector<128x32xf32>,
    %cst_49 = arith.constant 0.000000e+00 : f32
    %66 = vector.broadcast %cst_49 : f32 to vector<128x32xf32>
    %c0_50 = arith.constant 0 : index
    %c96 = arith.constant 96 : index
    %67 = vector.load %arg11[%c0_50, %c96] : memref<128x128xf32, #tpu.memory_space<vmem>>, vector<128x32xf32>
    tpu.vector_store %arg11[%c0_50, %c96], %66 {strides = array<i32>} : memref<128x128xf32, #tpu.memory_space<vmem>>, vector<128x32xf32>,
    return
  }
  func.func @transform_0(%arg0: i32) -> (i32, i32, i32) {
    %c0_i32 = arith.constant 0 : i32
    %c0_i32_0 = arith.constant 0 : i32
    %c0_i32_1 = arith.constant 0 : i32
    return %arg0, %c0_i32, %c0_i32_0 : i32, i32, i32
  }
  func.func @transform_1(%arg0: i32) -> (i32, i32) {
    %c0_i32 = arith.constant 0 : i32
    %c0_i32_0 = arith.constant 0 : i32
    return %arg0, %c0_i32 : i32, i32
  }
  func.func @transform_2(%arg0: i32) -> (i32, i32) {
    %c0_i32 = arith.constant 0 : i32
    %c0_i32_0 = arith.constant 0 : i32
    %c0_i32_1 = arith.constant 0 : i32
    return %c0_i32, %c0_i32_0 : i32, i32
  }
  func.func @transform_3(%arg0: i32) -> (i32, i32) {
    %c0_i32 = arith.constant 0 : i32
    %c0_i32_0 = arith.constant 0 : i32
    %c0_i32_1 = arith.constant 0 : i32
    return %c0_i32, %c0_i32_0 : i32, i32
  }
  func.func @transform_4(%arg0: i32) -> (i32, i32) {
    %c0_i32 = arith.constant 0 : i32
    %c0_i32_0 = arith.constant 0 : i32
    %c0_i32_1 = arith.constant 0 : i32
    return %c0_i32, %c0_i32_0 : i32, i32
  }
  func.func @transform_5(%arg0: i32) -> (i32, i32) {
    %c0_i32 = arith.constant 0 : i32
    %c0_i32_0 = arith.constant 0 : i32
    %c0_i32_1 = arith.constant 0 : i32
    return %c0_i32, %c0_i32_0 : i32, i32
  }
  func.func @transform_6(%arg0: i32) -> (i32, i32, i32) {
    %c0_i32 = arith.constant 0 : i32
    %c0_i32_0 = arith.constant 0 : i32
    %c0_i32_1 = arith.constant 0 : i32
    %c0_i32_2 = arith.constant 0 : i32
    return %c0_i32, %c0_i32_0, %c0_i32_1 : i32, i32, i32
  }
  func.func @transform_7(%arg0: i32) -> (i32, i32, i32) {
    %c0_i32 = arith.constant 0 : i32
    %c0_i32_0 = arith.constant 0 : i32
    %c0_i32_1 = arith.constant 0 : i32
    %c0_i32_2 = arith.constant 0 : i32
    return %c0_i32, %c0_i32_0, %c0_i32_1 : i32, i32, i32
  }
  func.func @transform_8(%arg0: i32) -> (i32, i32, i32) {
    %c0_i32 = arith.constant 0 : i32
    %c0_i32_0 = arith.constant 0 : i32
    %c0_i32_1 = arith.constant 0 : i32
    %c0_i32_2 = arith.constant 0 : i32
    return %c0_i32, %c0_i32_0, %c0_i32_1 : i32, i32, i32
  }
  func.func @transform_9(%arg0: i32) -> (i32, i32, i32) {
    %c0_i32 = arith.constant 0 : i32
    %c0_i32_0 = arith.constant 0 : i32
    %c0_i32_1 = arith.constant 0 : i32
    %c0_i32_2 = arith.constant 0 : i32
    return %c0_i32, %c0_i32_0, %c0_i32_1 : i32, i32, i32
  }
  func.func @transform_10(%arg0: i32) -> (i32, i32) {
    %c0_i32 = arith.constant 0 : i32
    %c0_i32_0 = arith.constant 0 : i32
    return %arg0, %c0_i32 : i32, i32
  }
}

</mosaic_0001>

<bundles_post_ra>
// kernel: ihgnn_forward.1
= control target key start
LH: loop header
LB: loop body
LE: loop exit
PB: predicated region body
PF: predicated region fallthrough
CT: control target
= control target key end

     0   :  { %s2682_s13 = smov 0   ;;  %s3264_s0 = inlined_call_operand.vmem [shape: f32[8,32,32], index: 0, kind: input, shape index: {}]   ;;  %s3265_s1 = inlined_call_operand.vmem [shape: f32[256,4], index: 1, kind: input, shape index: {}]   ;;  %s3266_s2 = inlined_call_operand.vmem [shape: bf16[4,32], index: 2, kind: input, shape index: {}]   ;;  %s3267_s3 = inlined_call_operand.vmem [shape: f32[1,32], index: 3, kind: input, shape index: {}]   ;;  %s3268_s4 = inlined_call_operand.vmem [shape: bf16[32,32], index: 4, kind: input, shape index: {}]   ;;  %s3269_s5 = inlined_call_operand.vmem [shape: f32[1,32], index: 5, kind: input, shape index: {}]   ;;  %s3270_s6 = inlined_call_operand.vmem [shape: bf16[2,64,32], index: 6, kind: input, shape index: {}]   ;;  %s3271_s7 = inlined_call_operand.vmem [shape: f32[2,1,32], index: 7, kind: input, shape index: {}]   ;;  %s3272_s8 = inlined_call_operand.vmem [shape: bf16[2,32,32], index: 8, kind: input, shape index: {}]   ;;  %s3273_s9 = inlined_call_operand.vmem [shape: f32[2,1,32], index: 9, kind: input, shape index: {}]   ;;  %s3274_s10 = inlined_call_operand.vmem [shape: f32[256,128], index: 10, kind: output, shape index: {}]  }
   0x1 LB: > { %s2192_s14 = sadd.s32 4294967295, %s2622_s13   ;;  %p2196_p0 = scmp.ge.s32.totalorder %s2622_s13, 1  ;;  %s2622_s13 = sphi %s2682_s13, %s20_s13  }
   0x2   : > { %p325_p1 = scmp.lt.s32.totalorder %s2622_s13, 3 }
   0x4   : > { %p326_p2 = pnand %p2196_p0, %p325_p1 }
   0x5   : > { %v413_v0 = vld [vmem:[%s3266_s2] sm:$0x3] (!%p326_p2)  ;;  %vm446_vm0 = vcmask (!%p326_p2), 1041408   ;;  %s2200_s17 = sshll.u32 (!%p326_p2), %s2192_s14, 4  ;;  %vm421_vm1 = vcmask (!%p326_p2), 31744   ;;  %v2603_v27 = vld [vmem:[%s3268_s4 + $0x8] sm:$0xff] (!%p326_p2)  }
   0x6   : > { %329 = sbr.rel (%p326_p2) target bundleno = 2173 (0x87d), region = 60  ;;  %2590 = vmatprep.subr.msk.bf16.mxu0 (!%p326_p2), %vm446_vm0, %v413_v0  ;;  %v448_v1 = vsel (!%p326_p2), %vm446_vm0, %v413_v0, 0  ;;  %p377_p3 = scmp.lt.s32.totalorder (!%p326_p2), %s2200_s17, 31  ;;  %v2602_v26 = vld [vmem:[%s3268_s4] sm:$0xff] (!%p326_p2)   ;;  %vm594_vm2 = vcmask (!%p326_p2), 261120   ;;  %vm1079_vm3 = vcmask (!%p326_p2), 523264  }
   0x7   : > { %2401 = vmatpush3.bf16.msra.mxu0 (!%p326_p2), %v448_v1  ;;  %2418 = vmatprep.subr.bf16.mxu1 (!%p326_p2), %v2602_v26  ;;  %v2204_v28 = vld [vmem:[%s3267_s3] ss:$0 sm:$0xff] (!%p326_p2)  ;;  %s2197_s28 = sshll.u32 (!%p326_p2), %s2192_s14, 2  ;;  %s2624_s27 = smov (!%p326_p2), 32   ;;  %vm1425_vm4 = vcmask (!%p326_p2), 523520   ;;  %vm2090_vm5 = vcmask (!%p326_p2), 785920  }
   0x8   : > { %2419 = vmatpush3.bf16.msra.mxu1 (!%p326_p2), %v2602_v26  ;;  %p370_p4 = scmp.lt.s32.totalorder (!%p326_p2), %s2197_s28, 7  ;;  %s2625_s15 = smov (!%p326_p2), 64   ;;  %vm2107_vm6 = vcmask (!%p326_p2), 1048320  }
   0x9   : > { %2420 = vmatprep.subr.bf16.mxu1 (!%p326_p2), %v2603_v27 }
   0xc   : > { %2421 = vmatpush3.bf16.msra.mxu1 (!%p326_p2), %v2603_v27  ;;  %v2768_v27 = vld [vmem:[%s3269_s5] ss:$0 sm:$0xff] (!%p326_p2) }
   0xd   : > { %s3276_s17 = smov (!%p377_p3, %s2200_s17), 31  ;;  %s3278_s28 = smov (!%p370_p4, %s2197_s28), 7 }
   0xe   : > { %s2201_s18 = sshll.u32 %s3276_s17, 3  ;;  %s2304_s29 = sshll.u32 %s3278_s28, 5 }
   0xf   : > { %s2703_s21 = scalar_lea.vmem %s3265_s1, %s2201_s18  ;;  %s2751_s12 = scalar_lea.vmem %s3264_s0, %s2304_s29 }
  0x10   : > { %v389_v2 = vld [vmem:[%s2703_s21] sm:$0xff]  ;;  %v390_v3 = vld [vmem:[%s2703_s21 + $0x8] sm:$0xff]  ;;  %v391_v4 = vld [vmem:[%s2703_s21 + $0x10] sm:$0xff]  ;;  %s2775_s20 = scalar_lea.vmem %s3274_s10, %s2201_s18 }
  0x11   : > { %v405_v5 = vpack.c.bf16 %v390_v3, %v389_v2  ;;  %v392_v6 = vld [vmem:[%s2703_s21 + $0x18] sm:$0xff]  ;;  %v393_v7 = vld [vmem:[%s2703_s21 + $0x20] sm:$0xff]  ;;  %v394_v8 = vld [vmem:[%s2703_s21 + $0x28] sm:$0xff] }
  0x12   : > { %v406_v9 = vpack.c.bf16 %v392_v6, %v391_v4  ;;  %v407_v10 = vpack.c.bf16 %v394_v8, %v393_v7  ;;  %v395_v11 = vld [vmem:[%s2703_s21 + $0x30] sm:$0xff]  ;;  %v396_v12 = vld [vmem:[%s2703_s21 + $0x38] sm:$0xff]  ;;  %v397_v13 = vld [vmem:[%s2703_s21 + $0x40] sm:$0xff] }
  0x13   : > { %2402 = vmatprep.mubr.msk.bf16.mxu0 %vm421_vm1, %v405_v5  ;;  %v398_v14 = vld [vmem:[%s2703_s21 + $0x48] sm:$0xff]  ;;  %v408_v15 = vpack.c.bf16 %v396_v12, %v395_v11  ;;  %v399_v17 = vld [vmem:[%s2703_s21 + $0x50] sm:$0xff]  ;;  %v400_v18 = vld [vmem:[%s2703_s21 + $0x58] sm:$0xff] }
  0x14   : > { %2403 = vmatmul.mubr.msk.bf16.vlgmr.msra.gmra.mrb[0].mxu0 %vm421_vm1, %v406_v9  ;;  %v409_v16 = vpack.c.bf16 %v398_v14, %v397_v13  ;;  %v401_v19 = vld [vmem:[%s2703_s21 + $0x60] sm:$0xff]  ;;  %v402_v20 = vld [vmem:[%s2703_s21 + $0x68] sm:$0xff]  ;;  %v410_v21 = vpack.c.bf16 %v400_v18, %v399_v17  ;;  %v403_v23 = vld [vmem:[%s2703_s21 + $0x70] sm:$0xff] }
  0x15   : > { %2406 = vmatprep.mubr.msk.bf16.mxu0 %vm421_vm1, %v407_v10  ;;  %v411_v22 = vpack.c.bf16 %v402_v20, %v401_v19  ;;  %v404_v24 = vld [vmem:[%s2703_s21 + $0x78] sm:$0xff] }
  0x16   : > { %v412_v25 = vpack.c.bf16 %v404_v24, %v403_v23  ;;  %v736_v24 = vld [vmem:[%s2751_s12 + $0x20] sm:$0xff] }
  0x1c   : > { %2407 = vmatmul.mubr.msk.bf16.gmra.mrb[4].mxu0 %vm421_vm1, %v408_v15 }
  0x1d   : > { %2410 = vmatprep.mubr.msk.bf16.mxu0 %vm421_vm1, %v409_v16 }
  0x24   : > { %2411 = vmatmul.mubr.msk.bf16.gmra.mrb[8].mxu0 %vm421_vm1, %v410_v21  ;;  %v732_v21 = vld [vmem:[%s2751_s12] sm:$0xff] }
  0x25   : > { %2414 = vmatprep.mubr.msk.bf16.mxu0 %vm421_vm1, %v411_v22  ;;  %v733_v22 = vld [vmem:[%s2751_s12 + $0x8] sm:$0xff] }
  0x26   : > { %v2755_v23 = vpack.c.bf16 %v733_v22, %v732_v21  ;;  %v2604_v22 = vld [vmem:[%s3270_s6] sm:$0xff]  }
  0x2c   : > { %2415 = vmatmul.mubr.msk.bf16.gmra.mrb[12].mxu0 %vm421_vm1, %v412_v25  ;;  %v737_v25 = vld [vmem:[%s2751_s12 + $0x28] sm:$0xff] }
  0x2d   : > { %2442 = vmatprep.mubr.msk.bf16.mxu0 %vm594_vm2, %v2755_v23  ;;  %v2761_v26 = vpack.c.bf16 %v737_v25, %v736_v24  ;;  %v2605_v24 = vld [vmem:[%s3270_s6 + $0x8] sm:$0xff]   ;;  %v2606_v25 = vld [vmem:[%s3270_s6 + $0x10] sm:$0xff]  }
  0xe7   : > { %v2404_v29 = vpop.f32.mrb[0].mxu0 }
  0xe8   : > { %v493_v30 = vadd.f32 %v2404_v29, %v2204_v28  ;;  %v484_v31 = vpop.f32.mrb[1].mxu0 }
  0xe9   : > { %v485_v32 = vadd.f32 %v2204_v28, %v484_v31  ;;  %v2405_v33 = vpop.f32.mrb[2].mxu0 }
  0xea   : > { %v496_v34 = vadd.f32 %v2405_v33, %v2204_v28  ;;  %v487_v35 = vpop.f32.mrb[3].mxu0  ;;  %v549_v37 = vmax.f32 %v493_v30, 0.0 }
  0xeb   : > { %v488_v36 = vadd.f32 %v2204_v28, %v487_v35  ;;  %v547_v39 = vmax.f32 %v485_v32, 0.0 }
  0xec   : > { %v550_v38 = vmax.f32 %v496_v34, 0.0 }
  0xed   : > { %v548_v40 = vmax.f32 %v488_v36, 0.0 }
  0xee   : > { %v564_v41 = vpack.c.bf16 %v550_v38, %v549_v37 }
  0xef   : > { %v2408_v42 = vpop.f32.mrb[4].mxu0  ;;  %v563_v43 = vpack.c.bf16 %v548_v40, %v547_v39 }
  0xf0   : > { %v509_v44 = vadd.f32 %v2408_v42, %v2204_v28  ;;  %v500_v45 = vpop.f32.mrb[5].mxu0  ;;  %v735_v42 = vld [vmem:[%s2751_s12 + $0x18] sm:$0xff] }
  0xf1   : > { %v501_v46 = vadd.f32 %v2204_v28, %v500_v45  ;;  %v2409_v47 = vpop.f32.mrb[6].mxu0  ;;  %2422 = vmatprep.mubr.msk.bf16.mxu1 %vm594_vm2, %v563_v43  ;;  %v740_v45 = vld [vmem:[%s2751_s12 + $0x40] sm:$0xff] }
  0xf2   : > { %v512_v48 = vadd.f32 %v2409_v47, %v2204_v28  ;;  %v503_v49 = vpop.f32.mrb[7].mxu0  ;;  %2423 = vmatmul.mubr.msk.bf16.vlgmr.msra.gmra.mrb[0].mxu1 %vm594_vm2, %v564_v41  ;;  %v553_v51 = vmax.f32 %v509_v44, 0.0  ;;  %v734_v41 = vld [vmem:[%s2751_s12 + $0x10] sm:$0xff] }
  0xf3   : > { %v504_v50 = vadd.f32 %v2204_v28, %v503_v49  ;;  %v551_v53 = vmax.f32 %v501_v46, 0.0  ;;  %v741_v46 = vld [vmem:[%s2751_s12 + $0x48] sm:$0xff] }
  0xf4   : > { %v554_v52 = vmax.f32 %v512_v48, 0.0 }
  0xf5   : > { %v552_v54 = vmax.f32 %v504_v50, 0.0  ;;  %v2808_v50 = vpack.c.bf16 %v735_v42, %v734_v41 }
  0xf6   : > { %v566_v55 = vpack.c.bf16 %v554_v52, %v553_v51  ;;  %v2815_v52 = vpack.c.bf16 %v741_v46, %v740_v45 }
  0xf7   : > { %v565_v56 = vpack.c.bf16 %v552_v54, %v551_v53  ;;  %v2412_v57 = vpop.f32.mrb[8].mxu0 }
  0xf8   : > { %v525_v58 = vadd.f32 %v2412_v57, %v2204_v28  ;;  %v516_v59 = vpop.f32.mrb[9].mxu0  ;;  %v738_v57 = vld [vmem:[%s2751_s12 + $0x30] sm:$0xff] }
  0xf9   : > { %v517_v60 = vadd.f32 %v2204_v28, %v516_v59  ;;  %v2413_v61 = vpop.f32.mrb[10].mxu0  ;;  %2426 = vmatprep.mubr.msk.bf16.mxu1 %vm594_vm2, %v565_v56 }
  0xfa   : > { %v557_v62 = vmax.f32 %v525_v58, 0.0  ;;  %v528_v63 = vadd.f32 %v2413_v61, %v2204_v28  ;;  %v519_v0 = vpop.f32.mrb[11].mxu0  ;;  %2427 = vmatmul.mubr.msk.bf16.gmra.mrb[4].mxu1 %vm594_vm2, %v566_v55  ;;  %v739_v58 = vld [vmem:[%s2751_s12 + $0x38] sm:$0xff]  ;;  %v744_v61 = vld [vmem:[%s2751_s12 + $0x60] sm:$0xff] }
  0xfb   : > { %v555_v1 = vmax.f32 %v517_v60, 0.0  ;;  %v520_v2 = vadd.f32 %v2204_v28, %v519_v0 }
  0xfc   : > { %v558_v3 = vmax.f32 %v528_v63, 0.0 }
  0xfd   : > { %v556_v4 = vmax.f32 %v520_v2, 0.0  ;;  %v2840_v2 = vpack.c.bf16 %v739_v58, %v738_v57 }
  0xfe   : > { %v568_v5 = vpack.c.bf16 %v558_v3, %v557_v62  ;;  %v745_v62 = vld [vmem:[%s2751_s12 + $0x68] sm:$0xff] }
  0xff   : > { %v567_v6 = vpack.c.bf16 %v556_v4, %v555_v1  ;;  %v2416_v7 = vpop.f32.mrb[12].mxu0  ;;  %v2847_v4 = vpack.c.bf16 %v745_v62, %v744_v61 }
 0x100   : > { %v541_v8 = vadd.f32 %v2416_v7, %v2204_v28  ;;  %v532_v9 = vpop.f32.mrb[13].mxu0 }
 0x101   : > { %v533_v10 = vadd.f32 %v2204_v28, %v532_v9  ;;  %v2417_v11 = vpop.f32.mrb[14].mxu0  ;;  %2430 = vmatprep.mubr.msk.bf16.mxu1 %vm594_vm2, %v567_v6  ;;  %v742_v9 = vld [vmem:[%s2751_s12 + $0x50] sm:$0xff] }
 0x102   : > { %v561_v12 = vmax.f32 %v541_v8, 0.0  ;;  %v544_v13 = vadd.f32 %v2417_v11, %v2204_v28  ;;  %v535_v14 = vpop.f32.mrb[15].mxu0  ;;  %2431 = vmatmul.mubr.msk.bf16.gmra.mrb[8].mxu1 %vm594_vm2, %v568_v5 }
 0x103   : > { %v559_v15 = vmax.f32 %v533_v10, 0.0  ;;  %v536_v16 = vadd.f32 %v2204_v28, %v535_v14  ;;  %v743_v10 = vld [vmem:[%s2751_s12 + $0x58] sm:$0xff] }
 0x104   : > { %v562_v17 = vmax.f32 %v544_v13, 0.0 }
 0x105   : > { %v560_v18 = vmax.f32 %v536_v16, 0.0  ;;  %v2870_v16 = vpack.c.bf16 %v743_v10, %v742_v9  ;;  %v2232_v10 = vld [vmem:[%s3271_s7] ss:$0 sm:$0xff] }
 0x106   : > { %v570_v19 = vpack.c.bf16 %v562_v17, %v561_v12 }
 0x107   : > { %v569_v20 = vpack.c.bf16 %v560_v18, %v559_v15 }
 0x109   : > { %2434 = vmatprep.mubr.msk.bf16.mxu1 %vm594_vm2, %v569_v20  ;;  %v747_v20 = vld [vmem:[%s2751_s12 + $0x78] sm:$0xff] }
 0x10a   : > { %2435 = vmatmul.mubr.msk.bf16.gmra.mrb[12].mxu1 %vm594_vm2, %v570_v19  ;;  %v746_v19 = vld [vmem:[%s2751_s12 + $0x70] sm:$0xff] }
 0x10b   : > { %2450 = vmatprep.mubr.msk.bf16.mxu1 %vm594_vm2, %v2761_v26  ;;  %v2888_v21 = vpack.c.bf16 %v747_v20, %v746_v19 }
 0x1c5   : > { %v2424_v28 = vpop.f32.mrb[0].mxu1 }
 0x1c6   : > { %v662_v29 = vadd.f32 %v2424_v28, %v2768_v27  ;;  %v653_v30 = vpop.f32.mrb[1].mxu1 }
 0x1c7   : > { %v654_v31 = vadd.f32 %v2768_v27, %v653_v30  ;;  %v2425_v32 = vpop.f32.mrb[2].mxu1 }
 0x1c8   : > { %718 = vst.msk [vmem:[%s2775_s20 + $0x10] sm:$0xff] %vm594_vm2, %v662_v29  ;;  %v665_v33 = vadd.f32 %v2425_v32, %v2768_v27  ;;  %v656_v34 = vpop.f32.mrb[3].mxu1 }
 0x1c9   : > { %716 = vst.msk [vmem:[%s2775_s20] sm:$0xff] %vm594_vm2, %v654_v31  ;;  %v657_v35 = vadd.f32 %v2768_v27, %v656_v34 }
 0x1ca   : > { %719 = vst.msk [vmem:[%s2775_s20 + $0x18] sm:$0xff] %vm594_vm2, %v665_v33  ;;  %v2787_v36 = vpack.c.bf16 %v665_v33, %v662_v29 }
 0x1cb   : > { %717 = vst.msk [vmem:[%s2775_s20 + $0x8] sm:$0xff] %vm594_vm2, %v657_v35  ;;  %v2791_v37 = vpack.c.bf16 %v657_v35, %v654_v31 }
 0x1cd   : > { %v2428_v38 = vpop.f32.mrb[4].mxu1  ;;  %2438 = vmatprep.subr.bf16.mxu0 %v2791_v37 }
 0x1ce   : > { %v678_v39 = vadd.f32 %v2428_v38, %v2768_v27  ;;  %v669_v40 = vpop.f32.mrb[5].mxu1  ;;  %2439 = vmatpush3.bf16.msra.mxu0 %v2791_v37 }
 0x1cf   : > { %v670_v43 = vadd.f32 %v2768_v27, %v669_v40  ;;  %v2429_v44 = vpop.f32.mrb[6].mxu1  ;;  %2440 = vmatprep.subr.bf16.mxu0 %v2787_v36 }
 0x1d0   : > { %722 = vst.msk [vmem:[%s2775_s20 + $0x30] sm:$0xff] %vm594_vm2, %v678_v39  ;;  %v681_v47 = vadd.f32 %v2429_v44, %v2768_v27  ;;  %v672_v48 = vpop.f32.mrb[7].mxu1 }
 0x1d1   : > { %720 = vst.msk [vmem:[%s2775_s20 + $0x20] sm:$0xff] %vm594_vm2, %v670_v43  ;;  %v673_v49 = vadd.f32 %v2768_v27, %v672_v48 }
 0x1d2   : > { %723 = vst.msk [vmem:[%s2775_s20 + $0x38] sm:$0xff] %vm594_vm2, %v681_v47  ;;  %v2812_v51 = vpack.c.bf16 %v681_v47, %v678_v39  ;;  %2441 = vmatpush3.bf16.msra.mxu0 %v2787_v36 }
 0x1d3   : > { %721 = vst.msk [vmem:[%s2775_s20 + $0x28] sm:$0xff] %vm594_vm2, %v673_v49  ;;  %v2819_v53 = vpack.c.bf16 %v673_v49, %v670_v43 }
 0x1d5   : > { %v2432_v54 = vpop.f32.mrb[8].mxu1  ;;  %2443 = vmatmul.mubr.msk.bf16.vlgmr.msra.gmra.mrb[16].mxu0 %vm594_vm2, %v2808_v50  ;;  %2446 = vmatprep.subr.bf16.mxu1 %v2819_v53 }
 0x1d6   : > { %v694_v55 = vadd.f32 %v2432_v54, %v2768_v27  ;;  %v685_v56 = vpop.f32.mrb[9].mxu1  ;;  %2447 = vmatpush3.bf16.msra.mxu1 %v2819_v53  ;;  %2458 = vmatprep.mubr.msk.bf16.mxu0 %vm594_vm2, %v2815_v52 }
 0x1d7   : > { %v686_v59 = vadd.f32 %v2768_v27, %v685_v56  ;;  %v2433_v60 = vpop.f32.mrb[10].mxu1  ;;  %2448 = vmatprep.subr.bf16.mxu1 %v2812_v51 }
 0x1d8   : > { %726 = vst.msk [vmem:[%s2775_s20 + $0x50] sm:$0xff] %vm594_vm2, %v694_v55  ;;  %v697_v63 = vadd.f32 %v2433_v60, %v2768_v27  ;;  %v688_v0 = vpop.f32.mrb[11].mxu1 }
 0x1d9   : > { %724 = vst.msk [vmem:[%s2775_s20 + $0x40] sm:$0xff] %vm594_vm2, %v686_v59  ;;  %v689_v1 = vadd.f32 %v2768_v27, %v688_v0 }
 0x1da   : > { %727 = vst.msk [vmem:[%s2775_s20 + $0x58] sm:$0xff] %vm594_vm2, %v697_v63  ;;  %v2844_v3 = vpack.c.bf16 %v697_v63, %v694_v55  ;;  %2449 = vmatpush3.bf16.msra.mxu1 %v2812_v51 }
 0x1db   : > { %725 = vst.msk [vmem:[%s2775_s20 + $0x48] sm:$0xff] %vm594_vm2, %v689_v1  ;;  %v2851_v5 = vpack.c.bf16 %v689_v1, %v686_v59 }
 0x1dd   : > { %v2436_v6 = vpop.f32.mrb[12].mxu1  ;;  %2451 = vmatmul.mubr.msk.bf16.vlgmr.msra.gmra.mrb[16].mxu1 %vm594_vm2, %v2840_v2  ;;  %2454 = vmatprep.subr.bf16.mxu0 %v2851_v5 }
 0x1de   : > { %v710_v7 = vadd.f32 %v2436_v6, %v2768_v27  ;;  %v701_v8 = vpop.f32.mrb[13].mxu1  ;;  %2455 = vmatpush3.bf16.msra.mxu0 %v2851_v5  ;;  %2466 = vmatprep.mubr.msk.bf16.mxu1 %vm594_vm2, %v2847_v4 }
 0x1df   : > { %v702_v11 = vadd.f32 %v2768_v27, %v701_v8  ;;  %v2437_v12 = vpop.f32.mrb[14].mxu1  ;;  %2456 = vmatprep.subr.bf16.mxu0 %v2844_v3 }
 0x1e0   : > { %730 = vst.msk [vmem:[%s2775_s20 + $0x70] sm:$0xff] %vm594_vm2, %v710_v7  ;;  %v713_v13 = vadd.f32 %v2437_v12, %v2768_v27  ;;  %v704_v14 = vpop.f32.mrb[15].mxu1 }
 0x1e1   : > { %728 = vst.msk [vmem:[%s2775_s20 + $0x60] sm:$0xff] %vm594_vm2, %v702_v11  ;;  %v705_v15 = vadd.f32 %v2768_v27, %v704_v14  ;;  %v2607_v27 = vld [vmem:[%s3270_s6 + $0x18] sm:$0xff]  }
 0x1e2   : > { %731 = vst.msk [vmem:[%s2775_s20 + $0x78] sm:$0xff] %vm594_vm2, %v713_v13  ;;  %v2874_v17 = vpack.c.bf16 %v713_v13, %v710_v7  ;;  %2457 = vmatpush3.bf16.msra.mxu0 %v2844_v3 }
 0x1e3   : > { %729 = vst.msk [vmem:[%s2775_s20 + $0x68] sm:$0xff] %vm594_vm2, %v705_v15  ;;  %v2879_v18 = vpack.c.bf16 %v705_v15, %v702_v11  ;;  %2470 = vmatprep.subr.bf16.mxu0 %v2604_v22 }
 0x1e5   : > { %2459 = vmatmul.mubr.msk.bf16.vlgmr.msra.gmra.mrb[20].mxu0 %vm594_vm2, %v2870_v16  ;;  %2462 = vmatprep.subr.bf16.mxu1 %v2879_v18 }
 0x1e6   : > { %2463 = vmatpush3.bf16.msra.mxu1 %v2879_v18  ;;  %2471 = vmatpush3.bf16.msra.mxu0 %v2604_v22 }
 0x1e7   : > { %2464 = vmatprep.subr.bf16.mxu1 %v2874_v17  ;;  %2472 = vmatprep.subr.bf16.mxu0 %v2605_v24 }
 0x1ea   : > { %2465 = vmatpush3.bf16.msra.mxu1 %v2874_v17  ;;  %2473 = vmatpush3.bf16.msra.mxu0 %v2605_v24 }
 0x1eb   : > { %2474 = vmatprep.subr.bf16.mxu0 %v2606_v25 }
 0x1ed   : > { %2467 = vmatmul.mubr.msk.bf16.vlgmr.msra.gmra.mrb[20].mxu1 %vm594_vm2, %v2888_v21 }
 0x1ee   : > { %2475 = vmatpush3.bf16.msra.mxu0 %v2606_v25 }
 0x1ef   : > { %2476 = vmatprep.subr.bf16.mxu0 %v2607_v27 }
 0x1f2   : > { %2477 = vmatpush3.bf16.msra.mxu0 %v2607_v27 }
 0x2a8   : > { %v2444_v28 = vpop.f32.mrb[16].mxu0 }
 0x2a9   : > { %v804_v29 = vpop.f32.mrb[17].mxu0 }
 0x2aa   : > { %v2445_v30 = vpop.f32.mrb[18].mxu0 }
 0x2ab   : > { %v985_v31 = vpack.c.bf16 %v2445_v30, %v2444_v28  ;;  %v807_v32 = vpop.f32.mrb[19].mxu0 }
 0x2ac   : > { %v984_v33 = vpack.c.bf16 %v807_v32, %v804_v29 }
 0x2ae   : > { %1000 = vrot.lane.b32.xlu0 %v984_v33, %s2624_s27 }
 0x2b0   : > { %v2452_v34 = vpop.f32.mrb[16].mxu1 }
 0x2b1   : > { %v859_v35 = vpop.f32.mrb[17].mxu1 }
 0x2b2   : > { %v2453_v38 = vpop.f32.mrb[18].mxu1  ;;  %1002 = vrot.lane.b32.xlu0 %v985_v31, %s2624_s27 }
 0x2b3   : > { %v987_v39 = vpack.c.bf16 %v2453_v38, %v2452_v34  ;;  %v862_v40 = vpop.f32.mrb[19].mxu1 }
 0x2b4   : > { %v986_v41 = vpack.c.bf16 %v862_v40, %v859_v35 }
 0x2b6   : > { %1004 = vrot.lane.b32.xlu1 %v986_v41, %s2624_s27 }
 0x2b8   : > { %v2460_v42 = vpop.f32.mrb[20].mxu0 }
 0x2b9   : > { %v914_v43 = vpop.f32.mrb[21].mxu0 }
 0x2ba   : > { %1006 = vrot.lane.b32.xlu1 %v987_v39, %s2624_s27  ;;  %v2461_v44 = vpop.f32.mrb[22].mxu0 }
 0x2bb   : > { %v989_v45 = vpack.c.bf16 %v2461_v44, %v2460_v42  ;;  %v917_v46 = vpop.f32.mrb[23].mxu0 }
 0x2bc   : > { %v988_v47 = vpack.c.bf16 %v917_v46, %v914_v43 }
 0x2be   : > { %1010 = vrot.lane.b32.xlu1 %v989_v45, %s2624_s27  ;;  %1008 = vrot.lane.b32.xlu0 %v988_v47, %s2624_s27 }
 0x2c0   : > { %v2468_v48 = vpop.f32.mrb[20].mxu1 }
 0x2c1   : > { %v969_v49 = vpop.f32.mrb[21].mxu1 }
 0x2c2   : > { %v2469_v54 = vpop.f32.mrb[22].mxu1 }
 0x2c3   : > { %v991_v55 = vpack.c.bf16 %v2469_v54, %v2468_v48  ;;  %v972_v56 = vpop.f32.mrb[23].mxu1 }
 0x2c4   : > { %v990_v57 = vpack.c.bf16 %v972_v56, %v969_v49 }
 0x2c5   : > { %1014 = vrot.lane.b32.xlu1 %v991_v55, %s2624_s27 }
 0x2c6   : > { %1012 = vrot.lane.b32.xlu0 %v990_v57, %s2624_s27 }
 0x320   : > { %v1001_v58 = vpop.permute.xlu0 %1000 }
 0x321   : > { %v1018_v59 = vsel %vm594_vm2, %v2791_v37, %v1001_v58 }
 0x322   : > { %2478 = vmatprep.mubr.msk.bf16.mxu0 %vm1079_vm3, %v1018_v59 }
 0x324   : > { %v1003_v60 = vpop.permute.xlu0 %1002 }
 0x325   : > { %v1021_v61 = vsel %vm594_vm2, %v2787_v36, %v1003_v60 }
 0x326   : > { %2479 = vmatmul.mubr.msk.bf16.vlgmr.msra.gmra.mrb[24].mxu0 %vm1079_vm3, %v1021_v61 }
 0x328   : > { %v1005_v62 = vpop.permute.xlu1 %1004 }
 0x329   : > { %v1024_v63 = vsel %vm594_vm2, %v2819_v53, %v1005_v62 }
 0x32a   : > { %2482 = vmatprep.mubr.msk.bf16.mxu0 %vm1079_vm3, %v1024_v63 }
 0x32c   : > { %v1007_v0 = vpop.permute.xlu1 %1006 }
 0x32d   : > { %v1027_v1 = vsel %vm594_vm2, %v2812_v51, %v1007_v0 }
 0x32e   : > { %2483 = vmatmul.mubr.msk.bf16.gmra.mrb[28].mxu0 %vm1079_vm3, %v1027_v1 }
 0x330   : > { %v1009_v37 = vpop.permute.xlu0 %1008  ;;  %v1011_v7 = vpop.permute.xlu1 %1010 }
 0x331   : > { %v1030_v6 = vsel %vm594_vm2, %v2851_v5, %v1009_v37  ;;  %v1033_v36 = vsel %vm594_vm2, %v2844_v3, %v1011_v7  ;;  %v2608_v3 = vld [vmem:[%s3272_s8] sm:$0xff]   ;;  %v2609_v5 = vld [vmem:[%s3272_s8 + $0x8] sm:$0xff]  }
 0x332   : > { %2486 = vmatprep.mubr.msk.bf16.mxu0 %vm1079_vm3, %v1030_v6  ;;  %2494 = vmatprep.subr.bf16.mxu1 %v2608_v3 }
 0x333   : > { %2495 = vmatpush3.bf16.msra.mxu1 %v2608_v3 }
 0x334   : > { %2496 = vmatprep.subr.bf16.mxu1 %v2609_v5 }
 0x336   : > { %2487 = vmatmul.mubr.msk.bf16.gmra.mrb[32].mxu0 %vm1079_vm3, %v1033_v36 }
 0x337   : > { %v1015_v9 = vpop.permute.xlu1 %1014  ;;  %2497 = vmatpush3.bf16.msra.mxu1 %v2609_v5 }
 0x338   : > { %v1013_v53 = vpop.permute.xlu0 %1012  ;;  %v1039_v51 = vsel %vm594_vm2, %v2874_v17, %v1015_v9 }
 0x339   : > { %v1036_v8 = vsel %vm594_vm2, %v2879_v18, %v1013_v53 }
 0x33a   : > { %2490 = vmatprep.mubr.msk.bf16.mxu0 %vm1079_vm3, %v1036_v8 }
 0x33e   : > { %2491 = vmatmul.mubr.msk.bf16.gmra.mrb[36].mxu0 %vm1079_vm3, %v1039_v51 }
 0x33f   : > { %2526 = vmatprep.mubr.msk.bf16.mxu0 %vm594_vm2, %v2761_v26 }
 0x3f9   : > { %v2480_v11 = vpop.f32.mrb[24].mxu0 }
 0x3fa   : > { %v1139_v12 = vadd.f32 %v2480_v11, %v2232_v10  ;;  %v1130_v13 = vpop.f32.mrb[25].mxu0 }
 0x3fb   : > { %v1131_v26 = vadd.f32 %v2232_v10, %v1130_v13  ;;  %v2481_v14 = vpop.f32.mrb[26].mxu0 }
 0x3fc   : > { %v1142_v15 = vadd.f32 %v2481_v14, %v2232_v10  ;;  %v1133_v17 = vpop.f32.mrb[27].mxu0  ;;  %v1195_v19 = vmax.f32 %v1139_v12, 0.0  ;;  %v2245_v12 = vld [vmem:[%s3273_s9] ss:$0 sm:$0xff] }
 0x3fd   : > { %v1134_v18 = vadd.f32 %v2232_v10, %v1133_v17  ;;  %v1193_v22 = vmax.f32 %v1131_v26, 0.0 }
 0x3fe   : > { %v1196_v20 = vmax.f32 %v1142_v15, 0.0 }
 0x3ff   : > { %v1194_v24 = vmax.f32 %v1134_v18, 0.0 }
 0x400   : > { %v1210_v25 = vpack.c.bf16 %v1196_v20, %v1195_v19 }
 0x401   : > { %v1209_v27 = vpack.c.bf16 %v1194_v24, %v1193_v22  ;;  %v2484_v28 = vpop.f32.mrb[28].mxu0 }
 0x402   : > { %v1155_v29 = vadd.f32 %v2484_v28, %v2232_v10  ;;  %v1146_v30 = vpop.f32.mrb[29].mxu0 }
 0x403   : > { %v1147_v31 = vadd.f32 %v2232_v10, %v1146_v30  ;;  %v2485_v32 = vpop.f32.mrb[30].mxu0  ;;  %2498 = vmatprep.mubr.msk.bf16.mxu1 %vm594_vm2, %v1209_v27 }
 0x404   : > { %v1158_v33 = vadd.f32 %v2485_v32, %v2232_v10  ;;  %v1149_v34 = vpop.f32.mrb[31].mxu0  ;;  %2499 = vmatmul.mubr.msk.bf16.vlgmr.msra.gmra.mrb[24].mxu1 %vm594_vm2, %v1210_v25  ;;  %v1199_v38 = vmax.f32 %v1155_v29, 0.0 }
 0x405   : > { %v1150_v35 = vadd.f32 %v2232_v10, %v1149_v34  ;;  %v1197_v40 = vmax.f32 %v1147_v31, 0.0 }
 0x406   : > { %v1200_v39 = vmax.f32 %v1158_v33, 0.0 }
 0x407   : > { %v1198_v41 = vmax.f32 %v1150_v35, 0.0 }
 0x408   : > { %v1212_v42 = vpack.c.bf16 %v1200_v39, %v1199_v38 }
 0x409   : > { %v1211_v43 = vpack.c.bf16 %v1198_v41, %v1197_v40  ;;  %v2488_v44 = vpop.f32.mrb[32].mxu0 }
 0x40a   : > { %v1171_v45 = vadd.f32 %v2488_v44, %v2232_v10  ;;  %v1162_v46 = vpop.f32.mrb[33].mxu0 }
 0x40b   : > { %v1163_v47 = vadd.f32 %v2232_v10, %v1162_v46  ;;  %v2489_v48 = vpop.f32.mrb[34].mxu0  ;;  %2502 = vmatprep.mubr.msk.bf16.mxu1 %vm594_vm2, %v1211_v43 }
 0x40c   : > { %v1174_v49 = vadd.f32 %v2489_v48, %v2232_v10  ;;  %v1165_v54 = vpop.f32.mrb[35].mxu0  ;;  %2503 = vmatmul.mubr.msk.bf16.gmra.mrb[28].mxu1 %vm594_vm2, %v1212_v42  ;;  %v1203_v56 = vmax.f32 %v1171_v45, 0.0 }
 0x40d   : > { %v1166_v55 = vadd.f32 %v2232_v10, %v1165_v54  ;;  %v1201_v58 = vmax.f32 %v1163_v47, 0.0 }
 0x40e   : > { %v1204_v57 = vmax.f32 %v1174_v49, 0.0 }
 0x40f   : > { %v1202_v59 = vmax.f32 %v1166_v55, 0.0  ;;  %v2610_v55 = vld [vmem:[%s3270_s6 + $0x20] sm:$0xff]  }
 0x410   : > { %v1214_v60 = vpack.c.bf16 %v1204_v57, %v1203_v56  ;;  %v2611_v56 = vld [vmem:[%s3270_s6 + $0x28] sm:$0xff]  }
 0x411   : > { %v1213_v61 = vpack.c.bf16 %v1202_v59, %v1201_v58  ;;  %v2492_v62 = vpop.f32.mrb[36].mxu0 }
 0x412   : > { %v1187_v63 = vadd.f32 %v2492_v62, %v2232_v10  ;;  %v1178_v0 = vpop.f32.mrb[37].mxu0 }
 0x413   : > { %v1179_v1 = vadd.f32 %v2232_v10, %v1178_v0  ;;  %v2493_v37 = vpop.f32.mrb[38].mxu0  ;;  %2506 = vmatprep.mubr.msk.bf16.mxu1 %vm594_vm2, %v1213_v61 }
 0x414   : > { %v1190_v6 = vadd.f32 %v2493_v37, %v2232_v10  ;;  %v1181_v7 = vpop.f32.mrb[39].mxu0  ;;  %2507 = vmatmul.mubr.msk.bf16.gmra.mrb[32].mxu1 %vm594_vm2, %v1214_v60  ;;  %v1207_v53 = vmax.f32 %v1187_v63, 0.0 }
 0x415   : > { %v1182_v36 = vadd.f32 %v2232_v10, %v1181_v7  ;;  %v1205_v9 = vmax.f32 %v1179_v1, 0.0 }
 0x416   : > { %v1208_v8 = vmax.f32 %v1190_v6, 0.0 }
 0x417   : > { %v1206_v51 = vmax.f32 %v1182_v36, 0.0 }
 0x418   : > { %v1216_v3 = vpack.c.bf16 %v1208_v8, %v1207_v53 }
 0x419   : > { %v1215_v5 = vpack.c.bf16 %v1206_v51, %v1205_v9 }
 0x41b   : > { %2510 = vmatprep.mubr.msk.bf16.mxu1 %vm594_vm2, %v1215_v5 }
 0x41c   : > { %2511 = vmatmul.mubr.msk.bf16.gmra.mrb[36].mxu1 %vm594_vm2, %v1216_v3 }
 0x41d   : > { %2518 = vmatprep.mubr.msk.bf16.mxu1 %vm594_vm2, %v2755_v23 }
 0x4d7   : > { %v2500_v11 = vpop.f32.mrb[24].mxu1 }
 0x4d8   : > { %v1298_v13 = vpop.f32.mrb[25].mxu1  ;;  %v2967_v18 = vadd.f32 %v2500_v11, %v2245_v12 }
 0x4d9   : > { %v2501_v10 = vpop.f32.mrb[26].mxu1  ;;  %v2961_v14 = vadd.f32 %v2245_v12, %v1298_v13 }
 0x4da   : > { %v1301_v26 = vpop.f32.mrb[27].mxu1  ;;  %v2963_v15 = vadd.f32 %v2501_v10, %v2245_v12 }
 0x4db   : > { %v2965_v17 = vadd.f32 %v2245_v12, %v1301_v26 }
 0x4dc   : > { %v2975_v23 = vpack.c.bf16 %v2963_v15, %v2967_v18 }
 0x4dd   : > { %v2971_v19 = vpack.c.bf16 %v2965_v17, %v2961_v14 }
 0x4df   : > { %v2504_v20 = vpop.f32.mrb[28].mxu1  ;;  %2514 = vmatprep.subr.bf16.mxu1 %v2971_v19 }
 0x4e0   : > { %v1314_v22 = vpop.f32.mrb[29].mxu1  ;;  %2515 = vmatpush3.bf16.msra.mxu1 %v2971_v19  ;;  %v2987_v30 = vadd.f32 %v2504_v20, %v2245_v12 }
 0x4e1   : > { %v2505_v24 = vpop.f32.mrb[30].mxu1  ;;  %2516 = vmatprep.subr.bf16.mxu1 %v2975_v23  ;;  %v2980_v27 = vadd.f32 %v2245_v12, %v1314_v22 }
 0x4e2   : > { %v1317_v25 = vpop.f32.mrb[31].mxu1  ;;  %v2982_v28 = vadd.f32 %v2505_v24, %v2245_v12 }
 0x4e3   : > { %v2984_v29 = vadd.f32 %v2245_v12, %v1317_v25 }
 0x4e4   : > { %2517 = vmatpush3.bf16.msra.mxu1 %v2975_v23  ;;  %v2995_v32 = vpack.c.bf16 %v2982_v28, %v2987_v30 }
 0x4e5   : > { %v2991_v31 = vpack.c.bf16 %v2984_v29, %v2980_v27 }
 0x4e7   : > { %v2508_v33 = vpop.f32.mrb[32].mxu1  ;;  %2519 = vmatmul.mubr.msk.bf16.vlgmr.msra.gmra.mrb[40].mxu1 %vm594_vm2, %v2808_v50  ;;  %2522 = vmatprep.subr.bf16.mxu0 %v2991_v31 }
 0x4e8   : > { %v1330_v34 = vpop.f32.mrb[33].mxu1  ;;  %2523 = vmatpush3.bf16.msra.mxu0 %v2991_v31  ;;  %2534 = vmatprep.mubr.msk.bf16.mxu1 %vm594_vm2, %v2815_v52  ;;  %v3011_v50 = vadd.f32 %v2508_v33, %v2245_v12 }
 0x4e9   : > { %v2509_v35 = vpop.f32.mrb[34].mxu1  ;;  %2524 = vmatprep.subr.bf16.mxu0 %v2995_v32  ;;  %v3004_v39 = vadd.f32 %v2245_v12, %v1330_v34 }
 0x4ea   : > { %v1333_v38 = vpop.f32.mrb[35].mxu1  ;;  %v3006_v40 = vadd.f32 %v2509_v35, %v2245_v12 }
 0x4eb   : > { %v3008_v41 = vadd.f32 %v2245_v12, %v1333_v38 }
 0x4ec   : > { %2525 = vmatpush3.bf16.msra.mxu0 %v2995_v32  ;;  %v3019_v52 = vpack.c.bf16 %v3006_v40, %v3011_v50 }
 0x4ed   : > { %v3015_v42 = vpack.c.bf16 %v3008_v41, %v3004_v39 }
 0x4ef   : > { %v2512_v43 = vpop.f32.mrb[36].mxu1  ;;  %2527 = vmatmul.mubr.msk.bf16.vlgmr.msra.gmra.mrb[40].mxu0 %vm594_vm2, %v2840_v2  ;;  %2530 = vmatprep.subr.bf16.mxu1 %v3015_v42 }
 0x4f0   : > { %v1346_v44 = vpop.f32.mrb[37].mxu1  ;;  %2531 = vmatpush3.bf16.msra.mxu1 %v3015_v42  ;;  %2542 = vmatprep.mubr.msk.bf16.mxu0 %vm594_vm2, %v2847_v4  ;;  %v3035_v2 = vadd.f32 %v2512_v43, %v2245_v12 }
 0x4f1   : > { %v2513_v45 = vpop.f32.mrb[38].mxu1  ;;  %2532 = vmatprep.subr.bf16.mxu1 %v3019_v52  ;;  %v3028_v47 = vadd.f32 %v2245_v12, %v1346_v44 }
 0x4f2   : > { %v1349_v46 = vpop.f32.mrb[39].mxu1  ;;  %v3030_v48 = vadd.f32 %v2513_v45, %v2245_v12 }
 0x4f3   : > { %v3032_v49 = vadd.f32 %v2245_v12, %v1349_v46 }
 0x4f4   : > { %2533 = vmatpush3.bf16.msra.mxu1 %v3019_v52  ;;  %v3043_v4 = vpack.c.bf16 %v3030_v48, %v3035_v2 }
 0x4f5   : > { %v3039_v54 = vpack.c.bf16 %v3032_v49, %v3028_v47  ;;  %2546 = vmatprep.subr.bf16.mxu1 %v2610_v55 }
 0x4f7   : > { %2535 = vmatmul.mubr.msk.bf16.vlgmr.msra.gmra.mrb[44].mxu1 %vm594_vm2, %v2870_v16  ;;  %2538 = vmatprep.subr.bf16.mxu0 %v3039_v54  ;;  %v2612_v16 = vld [vmem:[%s3270_s6 + $0x30] sm:$0xff]  }
 0x4f8   : > { %2539 = vmatpush3.bf16.msra.mxu0 %v3039_v54  ;;  %2547 = vmatpush3.bf16.msra.mxu1 %v2610_v55 }
 0x4f9   : > { %2540 = vmatprep.subr.bf16.mxu0 %v3043_v4  ;;  %2548 = vmatprep.subr.bf16.mxu1 %v2611_v56 }
 0x4fc   : > { %2541 = vmatpush3.bf16.msra.mxu0 %v3043_v4  ;;  %2549 = vmatpush3.bf16.msra.mxu1 %v2611_v56 }
 0x4fd   : > { %2550 = vmatprep.subr.bf16.mxu1 %v2612_v16 }
 0x4ff   : > { %2543 = vmatmul.mubr.msk.bf16.vlgmr.msra.gmra.mrb[44].mxu0 %vm594_vm2, %v2888_v21  ;;  %v2613_v21 = vld [vmem:[%s3270_s6 + $0x38] sm:$0xff]  }
 0x500   : > { %2551 = vmatpush3.bf16.msra.mxu1 %v2612_v16 }
 0x501   : > { %2552 = vmatprep.subr.bf16.mxu1 %v2613_v21 }
 0x504   : > { %2553 = vmatpush3.bf16.msra.mxu1 %v2613_v21 }
 0x5ba   : > { %v2520_v57 = vpop.f32.mrb[40].mxu1 }
 0x5bb   : > { %v1484_v58 = vpop.f32.mrb[41].mxu1 }
 0x5bc   : > { %v2521_v59 = vpop.f32.mrb[42].mxu1 }
 0x5bd   : > { %v1647_v60 = vpack.c.bf16 %v2521_v59, %v2520_v57  ;;  %v1487_v61 = vpop.f32.mrb[43].mxu1 }
 0x5be   : > { %v1646_v62 = vpack.c.bf16 %v1487_v61, %v1484_v58 }
 0x5bf   : > { %1664 = vrot.lane.b32.xlu1 %v1647_v60, %s2624_s27 }
 0x5c0   : > { %1662 = vrot.lane.b32.xlu0 %v1646_v62, %s2624_s27 }
 0x5c2   : > { %v2528_v63 = vpop.f32.mrb[40].mxu0 }
 0x5c3   : > { %v1533_v0 = vpop.f32.mrb[41].mxu0 }
 0x5c4   : > { %v2529_v1 = vpop.f32.mrb[42].mxu0 }
 0x5c5   : > { %v1649_v37 = vpack.c.bf16 %v2529_v1, %v2528_v63  ;;  %v1536_v6 = vpop.f32.mrb[43].mxu0 }
 0x5c6   : > { %v1648_v7 = vpack.c.bf16 %v1536_v6, %v1533_v0 }
 0x5c7   : > { %1668 = vrot.lane.b32.xlu1 %v1649_v37, %s2624_s27 }
 0x5c8   : > { %1666 = vrot.lane.b32.xlu0 %v1648_v7, %s2624_s27 }
 0x5ca   : > { %v2536_v36 = vpop.f32.mrb[44].mxu1 }
 0x5cb   : > { %v1582_v53 = vpop.f32.mrb[45].mxu1 }
 0x5cc   : > { %v2537_v8 = vpop.f32.mrb[46].mxu1 }
 0x5cd   : > { %v1651_v9 = vpack.c.bf16 %v2537_v8, %v2536_v36  ;;  %v1585_v51 = vpop.f32.mrb[47].mxu1 }
 0x5ce   : > { %v1650_v3 = vpack.c.bf16 %v1585_v51, %v1582_v53 }
 0x5cf   : > { %1672 = vrot.lane.b32.xlu1 %v1651_v9, %s2624_s27 }
 0x5d0   : > { %1670 = vrot.lane.b32.xlu0 %v1650_v3, %s2624_s27 }
 0x5d2   : > { %v2544_v5 = vpop.f32.mrb[44].mxu0 }
 0x5d3   : > { %v1631_v11 = vpop.f32.mrb[45].mxu0 }
 0x5d4   : > { %v2545_v12 = vpop.f32.mrb[46].mxu0 }
 0x5d5   : > { %v1653_v13 = vpack.c.bf16 %v2545_v12, %v2544_v5  ;;  %v1634_v10 = vpop.f32.mrb[47].mxu0 }
 0x5d6   : > { %v1652_v26 = vpack.c.bf16 %v1634_v10, %v1631_v11 }
 0x5d7   : > { %1676 = vrot.lane.b32.xlu1 %v1653_v13, %s2624_s27 }
 0x5d8   : > { %1674 = vrot.lane.b32.xlu0 %v1652_v26, %s2624_s27 }
 0x5db   : > { %1379 = vrot.lane.b32.xlu1 %v2965_v17, %s2624_s27 }
 0x5dc   : > { %1377 = vrot.lane.b32.xlu0 %v2961_v14, %s2624_s27 }
 0x5df   : > { %1383 = vrot.lane.b32.xlu1 %v2963_v15, %s2624_s27 }
 0x5e0   : > { %1381 = vrot.lane.b32.xlu0 %v2967_v18, %s2624_s27 }
 0x5e3   : > { %1387 = vrot.lane.b32.xlu1 %v2984_v29, %s2624_s27 }
 0x5e4   : > { %1385 = vrot.lane.b32.xlu0 %v2980_v27, %s2624_s27 }
 0x5e7   : > { %1391 = vrot.lane.b32.xlu1 %v2982_v28, %s2624_s27 }
 0x5e8   : > { %1389 = vrot.lane.b32.xlu0 %v2987_v30, %s2624_s27 }
 0x5eb   : > { %1395 = vrot.lane.b32.xlu1 %v3008_v41, %s2624_s27 }
 0x5ec   : > { %1393 = vrot.lane.b32.xlu0 %v3004_v39, %s2624_s27 }
 0x5ef   : > { %1399 = vrot.lane.b32.xlu1 %v3006_v40, %s2624_s27 }
 0x5f0   : > { %1397 = vrot.lane.b32.xlu0 %v3011_v50, %s2624_s27 }
 0x5f3   : > { %1403 = vrot.lane.b32.xlu1 %v3032_v49, %s2624_s27  ;;  %v2614_v49 = vld [vmem:[%s3272_s8 + $0x10] sm:$0xff]  }
 0x5f4   : > { %1401 = vrot.lane.b32.xlu0 %v3028_v47, %s2624_s27  ;;  %2570 = vmatprep.subr.bf16.mxu0 %v2614_v49 }
 0x5f5   : > { %2571 = vmatpush3.bf16.msra.mxu0 %v2614_v49 }
 0x5f7   : > { %1407 = vrot.lane.b32.xlu1 %v3030_v48, %s2624_s27 }
 0x5f8   : > { %1405 = vrot.lane.b32.xlu0 %v3035_v2, %s2624_s27  ;;  %v2615_v2 = vld [vmem:[%s3272_s8 + $0x18] sm:$0xff]  }
 0x5f9   : > { %2572 = vmatprep.subr.bf16.mxu0 %v2615_v2 }
 0x5fa   : > { %2573 = vmatpush3.bf16.msra.mxu0 %v2615_v2 }
 0x631   : > { %v1665_v14 = vpop.permute.xlu1 %1664 }
 0x632   : > { %v1663_v15 = vpop.permute.xlu0 %1662  ;;  %v1683_v18 = vsel %vm594_vm2, %v2975_v23, %v1665_v14 }
 0x633   : > { %v1680_v17 = vsel %vm594_vm2, %v2971_v19, %v1663_v15 }
 0x634   : > { %2554 = vmatprep.mubr.msk.bf16.mxu1 %vm1079_vm3, %v1680_v17 }
 0x635   : > { %2555 = vmatmul.mubr.msk.bf16.vlgmr.msra.gmra.mrb[48].mxu1 %vm1079_vm3, %v1683_v18 }
 0x639   : > { %v1669_v20 = vpop.permute.xlu1 %1668 }
 0x63a   : > { %v1667_v22 = vpop.permute.xlu0 %1666  ;;  %v1689_v25 = vsel %vm594_vm2, %v2995_v32, %v1669_v20 }
 0x63b   : > { %v1686_v24 = vsel %vm594_vm2, %v2991_v31, %v1667_v22 }
 0x63c   : > { %2558 = vmatprep.mubr.msk.bf16.mxu1 %vm1079_vm3, %v1686_v24 }
 0x63d   : > { %2559 = vmatmul.mubr.msk.bf16.gmra.mrb[52].mxu1 %vm1079_vm3, %v1689_v25 }
 0x641   : > { %v1673_v19 = vpop.permute.xlu1 %1672 }
 0x642   : > { %v1671_v23 = vpop.permute.xlu0 %1670  ;;  %v1695_v28 = vsel %vm594_vm2, %v3019_v52, %v1673_v19 }
 0x643   : > { %v1692_v27 = vsel %vm594_vm2, %v3015_v42, %v1671_v23 }
 0x644   : > { %2562 = vmatprep.mubr.msk.bf16.mxu1 %vm1079_vm3, %v1692_v27 }
 0x645   : > { %2563 = vmatmul.mubr.msk.bf16.gmra.mrb[56].mxu1 %vm1079_vm3, %v1695_v28 }
 0x649   : > { %v1677_v29 = vpop.permute.xlu1 %1676 }
 0x64a   : > { %v1675_v30 = vpop.permute.xlu0 %1674  ;;  %v1701_v32 = vsel %vm594_vm2, %v3043_v4, %v1677_v29 }
 0x64b   : > { %v1698_v31 = vsel %vm594_vm2, %v3039_v54, %v1675_v30  ;;  %v2273_v54 = vld [vmem:[%s3271_s7 + $0x1] ss:$0 sm:$0xff] }
 0x64c   : > { %2566 = vmatprep.mubr.msk.bf16.mxu1 %vm1079_vm3, %v1698_v31 }
 0x64d   : > { %v1380_v33 = vpop.permute.xlu1 %1379  ;;  %2567 = vmatmul.mubr.msk.bf16.gmra.mrb[60].mxu1 %vm1079_vm3, %v1701_v32 }
 0x64e   : > { %1427 = vst.msk [vmem:[%s2775_s20 + $0x8] sm:$0xff] %vm1425_vm4, %v1380_v33  ;;  %v1378_v34 = vpop.permute.xlu0 %1377 }
 0x64f   : > { %1426 = vst.msk [vmem:[%s2775_s20] sm:$0xff] %vm1425_vm4, %v1378_v34 }
 0x651   : > { %v1384_v35 = vpop.permute.xlu1 %1383 }
 0x652   : > { %1429 = vst.msk [vmem:[%s2775_s20 + $0x18] sm:$0xff] %vm1425_vm4, %v1384_v35  ;;  %v1382_v38 = vpop.permute.xlu0 %1381 }
 0x653   : > { %1428 = vst.msk [vmem:[%s2775_s20 + $0x10] sm:$0xff] %vm1425_vm4, %v1382_v38 }
 0x655   : > { %v1388_v39 = vpop.permute.xlu1 %1387 }
 0x656   : > { %1431 = vst.msk [vmem:[%s2775_s20 + $0x28] sm:$0xff] %vm1425_vm4, %v1388_v39  ;;  %v1386_v40 = vpop.permute.xlu0 %1385 }
 0x657   : > { %1430 = vst.msk [vmem:[%s2775_s20 + $0x20] sm:$0xff] %vm1425_vm4, %v1386_v40 }
 0x659   : > { %v1392_v41 = vpop.permute.xlu1 %1391 }
 0x65a   : > { %1433 = vst.msk [vmem:[%s2775_s20 + $0x38] sm:$0xff] %vm1425_vm4, %v1392_v41  ;;  %v1390_v50 = vpop.permute.xlu0 %1389 }
 0x65b   : > { %1432 = vst.msk [vmem:[%s2775_s20 + $0x30] sm:$0xff] %vm1425_vm4, %v1390_v50 }
 0x65d   : > { %v1396_v42 = vpop.permute.xlu1 %1395 }
 0x65e   : > { %1435 = vst.msk [vmem:[%s2775_s20 + $0x48] sm:$0xff] %vm1425_vm4, %v1396_v42  ;;  %v1394_v52 = vpop.permute.xlu0 %1393 }
 0x65f   : > { %1434 = vst.msk [vmem:[%s2775_s20 + $0x40] sm:$0xff] %vm1425_vm4, %v1394_v52 }
 0x661   : > { %v1400_v43 = vpop.permute.xlu1 %1399 }
 0x662   : > { %1437 = vst.msk [vmem:[%s2775_s20 + $0x58] sm:$0xff] %vm1425_vm4, %v1400_v43  ;;  %v1398_v44 = vpop.permute.xlu0 %1397 }
 0x663   : > { %1436 = vst.msk [vmem:[%s2775_s20 + $0x50] sm:$0xff] %vm1425_vm4, %v1398_v44  ;;  %v2291_v44 = vld [vmem:[%s3273_s9 + $0x1] ss:$0 sm:$0xff] }
 0x665   : > { %v1404_v45 = vpop.permute.xlu1 %1403 }
 0x666   : > { %1439 = vst.msk [vmem:[%s2775_s20 + $0x68] sm:$0xff] %vm1425_vm4, %v1404_v45  ;;  %v1402_v46 = vpop.permute.xlu0 %1401 }
 0x667   : > { %1438 = vst.msk [vmem:[%s2775_s20 + $0x60] sm:$0xff] %vm1425_vm4, %v1402_v46 }
 0x669   : > { %v1408_v47 = vpop.permute.xlu1 %1407 }
 0x66a   : > { %1441 = vst.msk [vmem:[%s2775_s20 + $0x78] sm:$0xff] %vm1425_vm4, %v1408_v47  ;;  %v1406_v48 = vpop.permute.xlu0 %1405 }
 0x66b   : > { %1440 = vst.msk [vmem:[%s2775_s20 + $0x70] sm:$0xff] %vm1425_vm4, %v1406_v48 }
 0x708   : > { %v2556_v4 = vpop.f32.mrb[48].mxu1 }
 0x709   : > { %v1802_v55 = vadd.f32 %v2556_v4, %v2273_v54  ;;  %v1793_v56 = vpop.f32.mrb[49].mxu1 }
 0x70a   : > { %v1794_v16 = vadd.f32 %v2273_v54, %v1793_v56  ;;  %v2557_v21 = vpop.f32.mrb[50].mxu1 }
 0x70b   : > { %v1805_v57 = vadd.f32 %v2557_v21, %v2273_v54  ;;  %v1796_v58 = vpop.f32.mrb[51].mxu1  ;;  %v1858_v60 = vmax.f32 %v1802_v55, 0.0 }
 0x70c   : > { %v1797_v59 = vadd.f32 %v2273_v54, %v1796_v58  ;;  %v1856_v62 = vmax.f32 %v1794_v16, 0.0 }
 0x70d   : > { %v1859_v61 = vmax.f32 %v1805_v57, 0.0 }
 0x70e   : > { %v1857_v63 = vmax.f32 %v1797_v59, 0.0 }
 0x70f   : > { %v1873_v0 = vpack.c.bf16 %v1859_v61, %v1858_v60 }
 0x710   : > { %v1872_v1 = vpack.c.bf16 %v1857_v63, %v1856_v62  ;;  %v2560_v37 = vpop.f32.mrb[52].mxu1 }
 0x711   : > { %v1818_v6 = vadd.f32 %v2560_v37, %v2273_v54  ;;  %v1809_v7 = vpop.f32.mrb[53].mxu1 }
 0x712   : > { %v1810_v36 = vadd.f32 %v2273_v54, %v1809_v7  ;;  %v2561_v53 = vpop.f32.mrb[54].mxu1  ;;  %2574 = vmatprep.mubr.msk.bf16.mxu0 %vm594_vm2, %v1872_v1 }
 0x713   : > { %v1821_v8 = vadd.f32 %v2561_v53, %v2273_v54  ;;  %v1812_v9 = vpop.f32.mrb[55].mxu1  ;;  %2575 = vmatmul.mubr.msk.bf16.vlgmr.msra.gmra.mrb[48].mxu0 %vm594_vm2, %v1873_v0  ;;  %v1862_v3 = vmax.f32 %v1818_v6, 0.0 }
 0x714   : > { %v1813_v51 = vadd.f32 %v2273_v54, %v1812_v9  ;;  %v1860_v11 = vmax.f32 %v1810_v36, 0.0 }
 0x715   : > { %v1863_v5 = vmax.f32 %v1821_v8, 0.0 }
 0x716   : > { %v1861_v12 = vmax.f32 %v1813_v51, 0.0 }
 0x717   : > { %v1875_v13 = vpack.c.bf16 %v1863_v5, %v1862_v3 }
 0x718   : > { %v1874_v10 = vpack.c.bf16 %v1861_v12, %v1860_v11  ;;  %v2564_v26 = vpop.f32.mrb[56].mxu1 }
 0x719   : > { %v1834_v14 = vadd.f32 %v2564_v26, %v2273_v54  ;;  %v1825_v15 = vpop.f32.mrb[57].mxu1 }
 0x71a   : > { %v1826_v17 = vadd.f32 %v2273_v54, %v1825_v15  ;;  %v2565_v18 = vpop.f32.mrb[58].mxu1  ;;  %2578 = vmatprep.mubr.msk.bf16.mxu0 %vm594_vm2, %v1874_v10 }
 0x71b   : > { %v1837_v20 = vadd.f32 %v2565_v18, %v2273_v54  ;;  %v1828_v22 = vpop.f32.mrb[59].mxu1  ;;  %2579 = vmatmul.mubr.msk.bf16.gmra.mrb[52].mxu0 %vm594_vm2, %v1875_v13  ;;  %v1866_v25 = vmax.f32 %v1834_v14, 0.0  ;;  %v2626_v13 = vmov 0.0  }
 0x71c   : > { %v1829_v24 = vadd.f32 %v2273_v54, %v1828_v22  ;;  %v1864_v23 = vmax.f32 %v1826_v17, 0.0 }
 0x71d   : > { %v1867_v19 = vmax.f32 %v1837_v20, 0.0 }
 0x71e   : > { %v1865_v27 = vmax.f32 %v1829_v24, 0.0 }
 0x71f   : > { %v1877_v28 = vpack.c.bf16 %v1867_v19, %v1866_v25 }
 0x720   : > { %v1876_v29 = vpack.c.bf16 %v1865_v27, %v1864_v23  ;;  %v2568_v30 = vpop.f32.mrb[60].mxu1 }
 0x721   : > { %v1850_v31 = vadd.f32 %v2568_v30, %v2273_v54  ;;  %v1841_v32 = vpop.f32.mrb[61].mxu1 }
 0x722   : > { %v1842_v33 = vadd.f32 %v2273_v54, %v1841_v32  ;;  %v2569_v34 = vpop.f32.mrb[62].mxu1  ;;  %2582 = vmatprep.mubr.msk.bf16.mxu0 %vm594_vm2, %v1876_v29 }
 0x723   : > { %v1853_v35 = vadd.f32 %v2569_v34, %v2273_v54  ;;  %v1844_v38 = vpop.f32.mrb[63].mxu1  ;;  %2583 = vmatmul.mubr.msk.bf16.gmra.mrb[56].mxu0 %vm594_vm2, %v1877_v28  ;;  %v1870_v40 = vmax.f32 %v1850_v31, 0.0 }
 0x724   : > { %v1845_v39 = vadd.f32 %v2273_v54, %v1844_v38  ;;  %v1868_v50 = vmax.f32 %v1842_v33, 0.0 }
 0x725   : > { %v1871_v41 = vmax.f32 %v1853_v35, 0.0 }
 0x726   : > { %v1869_v42 = vmax.f32 %v1845_v39, 0.0 }
 0x727   : > { %v1879_v52 = vpack.c.bf16 %v1871_v41, %v1870_v40 }
 0x728   : > { %v1878_v43 = vpack.c.bf16 %v1869_v42, %v1868_v50 }
 0x72a   : > { %2586 = vmatprep.mubr.msk.bf16.mxu0 %vm594_vm2, %v1878_v43 }
 0x72b   : > { %2587 = vmatmul.mubr.msk.bf16.gmra.mrb[60].mxu0 %vm594_vm2, %v1879_v52 }
 0x7e6   : > { %v2576_v45 = vpop.f32.mrb[48].mxu0 }
 0x7e7   : > { %v1972_v46 = vadd.f32 %v2576_v45, %v2291_v44  ;;  %v1963_v47 = vpop.f32.mrb[49].mxu0 }
 0x7e8   : > { %v2577_v48 = vpop.f32.mrb[50].mxu0  ;;  %v1964_v54 = vadd.f32 %v2291_v44, %v1963_v47 }
 0x7e9   : > { %v1975_v49 = vadd.f32 %v2577_v48, %v2291_v44  ;;  %v1966_v2 = vpop.f32.mrb[51].mxu0  ;;  %2046 = vrot.lane.b32.xlu0 %v1972_v46, %s2625_s15 }
 0x7ea   : > { %v1967_v4 = vadd.f32 %v2291_v44, %v1966_v2 }
 0x7eb   : > { %2048 = vrot.lane.b32.xlu1 %v1975_v49, %s2625_s15 }
 0x7ed   : > { %2042 = vrot.lane.b32.xlu0 %v1964_v54, %s2625_s15 }
 0x7ee   : > { %v2580_v55 = vpop.f32.mrb[52].mxu0 }
 0x7ef   : > { %v1988_v56 = vadd.f32 %v2580_v55, %v2291_v44  ;;  %v1979_v16 = vpop.f32.mrb[53].mxu0  ;;  %2044 = vrot.lane.b32.xlu1 %v1967_v4, %s2625_s15 }
 0x7f0   : > { %v2581_v21 = vpop.f32.mrb[54].mxu0  ;;  %v1980_v59 = vadd.f32 %v2291_v44, %v1979_v16 }
 0x7f1   : > { %v1991_v57 = vadd.f32 %v2581_v21, %v2291_v44  ;;  %v1982_v58 = vpop.f32.mrb[55].mxu0  ;;  %2054 = vrot.lane.b32.xlu0 %v1988_v56, %s2625_s15 }
 0x7f2   : > { %v1983_v60 = vadd.f32 %v2291_v44, %v1982_v58 }
 0x7f3   : > { %2056 = vrot.lane.b32.xlu1 %v1991_v57, %s2625_s15 }
 0x7f5   : > { %2050 = vrot.lane.b32.xlu0 %v1980_v59, %s2625_s15 }
 0x7f6   : > { %v2584_v61 = vpop.f32.mrb[56].mxu0 }
 0x7f7   : > { %v2004_v62 = vadd.f32 %v2584_v61, %v2291_v44  ;;  %v1995_v63 = vpop.f32.mrb[57].mxu0  ;;  %2052 = vrot.lane.b32.xlu1 %v1983_v60, %s2625_s15 }
 0x7f8   : > { %v2585_v0 = vpop.f32.mrb[58].mxu0  ;;  %v1996_v6 = vadd.f32 %v2291_v44, %v1995_v63 }
 0x7f9   : > { %v2007_v1 = vadd.f32 %v2585_v0, %v2291_v44  ;;  %v1998_v37 = vpop.f32.mrb[59].mxu0  ;;  %2062 = vrot.lane.b32.xlu0 %v2004_v62, %s2625_s15 }
 0x7fa   : > { %v1999_v7 = vadd.f32 %v2291_v44, %v1998_v37 }
 0x7fb   : > { %2064 = vrot.lane.b32.xlu1 %v2007_v1, %s2625_s15 }
 0x7fd   : > { %2058 = vrot.lane.b32.xlu0 %v1996_v6, %s2625_s15 }
 0x7fe   : > { %v2588_v36 = vpop.f32.mrb[60].mxu0 }
 0x7ff   : > { %2060 = vrot.lane.b32.xlu1 %v1999_v7, %s2625_s15  ;;  %v2011_v53 = vpop.f32.mrb[61].mxu0  ;;  %v2020_v5 = vadd.f32 %v2588_v36, %v2291_v44 }
 0x800   : > { %v2012_v8 = vadd.f32 %v2291_v44, %v2011_v53  ;;  %v2589_v9 = vpop.f32.mrb[62].mxu0 }
 0x801   : > { %v2014_v51 = vpop.f32.mrb[63].mxu0  ;;  %v2023_v11 = vadd.f32 %v2589_v9, %v2291_v44 }
 0x802   : > { %v2015_v3 = vadd.f32 %v2291_v44, %v2014_v51  ;;  %2066 = vrot.lane.b32.xlu0 %v2012_v8, %s2625_s15 }
 0x804   : > { %2068 = vrot.lane.b32.xlu1 %v2015_v3, %s2625_s15 }
 0x806   : > { %2070 = vrot.lane.b32.xlu0 %v2020_v5, %s2625_s15 }
 0x808   : > { %2072 = vrot.lane.b32.xlu1 %v2023_v11, %s2625_s15 }
 0x85b   : > { %v2047_v12 = vpop.permute.xlu0 %2046 }
 0x85c   : > { %2093 = vst.msk [vmem:[%s2775_s20 + $0x10] sm:$0xff] %vm2090_vm5, %v2047_v12 }
 0x85d   : > { %2110 = vst.msk [vmem:[%s2775_s20 + $0x10] sm:$0xff] %vm2107_vm6, %v2626_v13  ;;  %v2049_v10 = vpop.permute.xlu1 %2048 }
 0x85e   : > { %2094 = vst.msk [vmem:[%s2775_s20 + $0x18] sm:$0xff] %vm2090_vm5, %v2049_v10 }
 0x85f   : > { %2111 = vst.msk [vmem:[%s2775_s20 + $0x18] sm:$0xff] %vm2107_vm6, %v2626_v13  ;;  %v2043_v26 = vpop.permute.xlu0 %2042 }
 0x860   : > { %2091 = vst.msk [vmem:[%s2775_s20] sm:$0xff] %vm2090_vm5, %v2043_v26 }
 0x861   : > { %2108 = vst.msk [vmem:[%s2775_s20] sm:$0xff] %vm2107_vm6, %v2626_v13  ;;  %v2045_v14 = vpop.permute.xlu1 %2044 }
 0x862   : > { %2092 = vst.msk [vmem:[%s2775_s20 + $0x8] sm:$0xff] %vm2090_vm5, %v2045_v14 }
 0x863   : > { %2109 = vst.msk [vmem:[%s2775_s20 + $0x8] sm:$0xff] %vm2107_vm6, %v2626_v13  ;;  %v2055_v15 = vpop.permute.xlu0 %2054 }
 0x864   : > { %2097 = vst.msk [vmem:[%s2775_s20 + $0x30] sm:$0xff] %vm2090_vm5, %v2055_v15 }
 0x865   : > { %2114 = vst.msk [vmem:[%s2775_s20 + $0x30] sm:$0xff] %vm2107_vm6, %v2626_v13  ;;  %v2057_v17 = vpop.permute.xlu1 %2056 }
 0x866   : > { %2098 = vst.msk [vmem:[%s2775_s20 + $0x38] sm:$0xff] %vm2090_vm5, %v2057_v17 }
 0x867   : > { %2115 = vst.msk [vmem:[%s2775_s20 + $0x38] sm:$0xff] %vm2107_vm6, %v2626_v13  ;;  %v2051_v18 = vpop.permute.xlu0 %2050 }
 0x868   : > { %2095 = vst.msk [vmem:[%s2775_s20 + $0x20] sm:$0xff] %vm2090_vm5, %v2051_v18 }
 0x869   : > { %2112 = vst.msk [vmem:[%s2775_s20 + $0x20] sm:$0xff] %vm2107_vm6, %v2626_v13  ;;  %v2053_v20 = vpop.permute.xlu1 %2052 }
 0x86a   : > { %2096 = vst.msk [vmem:[%s2775_s20 + $0x28] sm:$0xff] %vm2090_vm5, %v2053_v20 }
 0x86b   : > { %2113 = vst.msk [vmem:[%s2775_s20 + $0x28] sm:$0xff] %vm2107_vm6, %v2626_v13  ;;  %v2063_v22 = vpop.permute.xlu0 %2062 }
 0x86c   : > { %2101 = vst.msk [vmem:[%s2775_s20 + $0x50] sm:$0xff] %vm2090_vm5, %v2063_v22 }
 0x86d   : > { %2118 = vst.msk [vmem:[%s2775_s20 + $0x50] sm:$0xff] %vm2107_vm6, %v2626_v13  ;;  %v2065_v24 = vpop.permute.xlu1 %2064 }
 0x86e   : > { %2102 = vst.msk [vmem:[%s2775_s20 + $0x58] sm:$0xff] %vm2090_vm5, %v2065_v24 }
 0x86f   : > { %2119 = vst.msk [vmem:[%s2775_s20 + $0x58] sm:$0xff] %vm2107_vm6, %v2626_v13  ;;  %v2059_v25 = vpop.permute.xlu0 %2058 }
 0x870   : > { %2099 = vst.msk [vmem:[%s2775_s20 + $0x40] sm:$0xff] %vm2090_vm5, %v2059_v25 }
 0x871   : > { %2116 = vst.msk [vmem:[%s2775_s20 + $0x40] sm:$0xff] %vm2107_vm6, %v2626_v13  ;;  %v2061_v19 = vpop.permute.xlu1 %2060 }
 0x872   : > { %2100 = vst.msk [vmem:[%s2775_s20 + $0x48] sm:$0xff] %vm2090_vm5, %v2061_v19 }
 0x873   : > { %2117 = vst.msk [vmem:[%s2775_s20 + $0x48] sm:$0xff] %vm2107_vm6, %v2626_v13 }
 0x874   : > { %v2067_v23 = vpop.permute.xlu0 %2066 }
 0x875   : > { %2103 = vst.msk [vmem:[%s2775_s20 + $0x60] sm:$0xff] %vm2090_vm5, %v2067_v23 }
 0x876   : > { %2120 = vst.msk [vmem:[%s2775_s20 + $0x60] sm:$0xff] %vm2107_vm6, %v2626_v13  ;;  %v2069_v27 = vpop.permute.xlu1 %2068 }
 0x877   : > { %2104 = vst.msk [vmem:[%s2775_s20 + $0x68] sm:$0xff] %vm2090_vm5, %v2069_v27 }
 0x878   : > { %2121 = vst.msk [vmem:[%s2775_s20 + $0x68] sm:$0xff] %vm2107_vm6, %v2626_v13  ;;  %v2071_v28 = vpop.permute.xlu0 %2070 }
 0x879   : > { %2105 = vst.msk [vmem:[%s2775_s20 + $0x70] sm:$0xff] %vm2090_vm5, %v2071_v28 }
 0x87a   : > { %2122 = vst.msk [vmem:[%s2775_s20 + $0x70] sm:$0xff] %vm2107_vm6, %v2626_v13  ;;  %v2073_v29 = vpop.permute.xlu1 %2072 }
 0x87b   : > { %2106 = vst.msk [vmem:[%s2775_s20 + $0x78] sm:$0xff] %vm2090_vm5, %v2073_v29 }
 0x87c   : > { %2123 = vst.msk [vmem:[%s2775_s20 + $0x78] sm:$0xff] %vm2107_vm6, %v2626_v13 }
 0x87d PF: > { %s20_s13 = sadd.s32 1, %s2622_s13  }
 0x87e   : > { %p17_p5 = scmp.ge.s32.totalorder %s20_s13, 4  }
 0x880   :  { %19 = sbr.rel (!%p17_p5) target bundleno = 1 (0x1), region = 97 }

</bundles_post_ra>
